<compile_context>
chip_gen: v6e
topology: v6e:2x2x1
jax: 0.10.0
libtpu: 0.0.40
codegen_flags: <defaults>
</compile_context>

<pallas_src>
import jax
import jax.numpy as jnp
from jax.experimental import pallas as pl
from jax.experimental.pallas import tpu as pltpu

# Small shapes consistent with the module structure (224 -> 16, 64 -> 16).
N, C_IN, H, W = 2, 3, 16, 16
C_OUT = 16
NUM_CLASSES = 2
KH = KW = 3
TAPS = KH * KW * C_IN          # 27 im2col taps (ky, kx, ci)
HW = H * W                     # 256 spatial positions (lane axis)
FEAT = C_OUT * HW              # 4096 flattened features (torch CHW order)


# ------------------------------------------------------- fused forward kernel
def fused_forward_kernel(xcol_ref, wconv_ref, bconv_ref, wfc_ref, bfc_ref, out_ref):
    # xcol_ref:  (N, TAPS, HW)              im2col'd padded input, hw on lanes
    # wconv_ref: (TAPS, C_OUT, 1)           one (C_OUT, 1) weight column per tap
    # bconv_ref: (C_OUT, 1)
    # wfc_ref:   (NUM_CLASSES, C_OUT, HW)   fc weight in native (C, H, W) flatten order
    # bfc_ref:   (1, NUM_CLASSES)
    # out_ref:   (N, NUM_CLASSES)
    x = xcol_ref[...]                                    # load once, slice the value
    acc = jnp.zeros((N, C_OUT, HW), jnp.float32)         # lane-dense accumulator (~8 vregs)
    for t in range(TAPS):                                # unrolled 27-tap conv (exact f32)
        acc = acc + x[:, t:t + 1, :] * wconv_ref[t]      # (N,1,HW) * (C_OUT,1) -> (N,C_OUT,HW)
    act = jnp.maximum(acc + bconv_ref[...], 0.0)         # conv bias + relu (still CHW order)

    # fc: logits[n, k] = sum_{c, hw} act[n, c, hw] * wfc[k, c, hw] + b_fc[k]
    wfc = wfc_ref[...]                                   # (K, C_OUT, HW)
    prod = act[:, None, :, :] * wfc[None, :, :, :]       # (N, K, C_OUT, HW)
    logits = jnp.sum(jnp.sum(prod, axis=-1), axis=-1)    # lane reduce, then lane reduce -> (N, K)
    out_ref[...] = logits + bfc_ref[...]


# ------------------------------------------------------------------ forward
def spoof_neural_net_forward(x_nchw, params):
    w_conv, b_conv, w_fc, b_fc = params
    # Wrapper-side im2col of the 4 KB input (one tiny XLA fusion); keeps the kernel
    # a single launch with lane-dense 256-wide slabs and zero in-kernel reshapes.
    xpad = jnp.pad(x_nchw, ((0, 0), (0, 0), (1, 1), (1, 1)))        # (N, C_IN, H+2, W+2)
    cols = [xpad[:, :, ky:ky + H, kx:kx + W]
            for ky in range(KH) for kx in range(KW)]                # 9 x (N, C_IN, H, W)
    xcol = jnp.stack(cols, axis=1).reshape(N, TAPS, HW)             # (N, 27, 256)

    # conv weight (co, ci, ky, kx) -> (ky, kx, ci, co) -> (27, 16, 1): matches tap order above
    wconv_r = jnp.transpose(w_conv, (2, 3, 1, 0)).reshape(TAPS, C_OUT, 1)
    bconv_r = b_conv.reshape(C_OUT, 1)
    # fc weight stays in torch's CHW flatten order -> plain reshape, no transpose needed
    wfc_r = w_fc.reshape(NUM_CLASSES, C_OUT, HW)                    # (2, 16, 256)
    bfc_r = b_fc.reshape(1, NUM_CLASSES)

    return pl.pallas_call(
        fused_forward_kernel,
        out_shape=jax.ShapeDtypeStruct((N, NUM_CLASSES), jnp.float32),
        in_specs=[pl.BlockSpec(memory_space=pltpu.MemorySpace.VMEM)] * 5,
        out_specs=pl.BlockSpec(memory_space=pltpu.MemorySpace.VMEM),
    )(xcol, wconv_r, bconv_r, wfc_r, bfc_r)


# ------------------------------------------------------------------ reference
def init_params(key):
    k1, k2, k3, k4 = jax.random.split(key, 4)
    w_conv = 0.05 * jax.random.normal(k1, (C_OUT, C_IN, KH, KW), jnp.float32)
    b_conv = 0.05 * jax.random.normal(k2, (C_OUT,), jnp.float32)
    w_fc = 0.02 * jax.random.normal(k3, (NUM_CLASSES, FEAT), jnp.float32)
    b_fc = 0.02 * jax.random.normal(k4, (NUM_CLASSES,), jnp.float32)
    return w_conv, b_conv, w_fc, b_fc


def reference_forward(x_nchw, params):
    w_conv, b_conv, w_fc, b_fc = params
    y = jax.lax.conv_general_dilated(
        x_nchw, w_conv, window_strides=(1, 1), padding="SAME",
        dimension_numbers=("NCHW", "OIHW", "NCHW"),
        precision=jax.lax.Precision.HIGHEST)
    y = jnp.maximum(y + b_conv[None, :, None, None], 0.0)
    y = y.reshape(N, FEAT)                                          # torch.flatten(x, 1) order
    return jnp.dot(y, w_fc.T, precision=jax.lax.Precision.HIGHEST) + b_fc


if __name__ == "__main__":
    key = jax.random.PRNGKey(0)
    kx, kp = jax.random.split(key)
    x = jax.random.normal(kx, (N, C_IN, H, W), jnp.float32)
    params = init_params(kp)

    out = jax.jit(spoof_neural_net_forward)(x, params)
    out = jax.block_until_ready(out)

    ref = reference_forward(x, params)
    assert out.shape == (N, NUM_CLASSES)
    # All-f32 exact VPU path: tolerance tightened from 2e-2 to 1e-4 per review.
    assert jnp.allclose(out, ref, rtol=1e-4, atol=1e-4), "mismatch vs reference"

    print("KERNEL_OK")
</pallas_src>

<mosaic_0001>
module attributes {stable_mosaic.version = 11 : i64} {
  func.func @fused_forward_kernel(%arg0: memref<2x27x256xf32, #tpu.memory_space<vmem>>, %arg1: memref<27x16x1xf32, #tpu.memory_space<vmem>>, %arg2: memref<16x1xf32, #tpu.memory_space<vmem>>, %arg3: memref<2x16x256xf32, #tpu.memory_space<vmem>>, %arg4: memref<1x2xf32, #tpu.memory_space<vmem>>, %arg5: memref<2x2xf32, #tpu.memory_space<vmem>>) attributes {dimension_semantics = [], scalar_prefetch = 0 : i64, scratch_operands = 0 : i64, tpu.core_type = #tpu.core_type<tc>} {
    %c0 = arith.constant 0 : index
    %c0_0 = arith.constant 0 : index
    %c0_1 = arith.constant 0 : index
    %0 = vector.load %arg0[%c0, %c0_0, %c0_1] : memref<2x27x256xf32, #tpu.memory_space<vmem>>, vector<2x27x256xf32>
    %cst = arith.constant 0.000000e+00 : f32
    %1 = vector.broadcast %cst : f32 to vector<2x16x256xf32>
    %2 = vector.extract_strided_slice %0 {offsets = [0, 0, 0], sizes = [2, 1, 256], strides = [1, 1, 1]} : vector<2x27x256xf32> to vector<2x1x256xf32>
    %c0_2 = arith.constant 0 : index
    %c0_3 = arith.constant 0 : index
    %c0_4 = arith.constant 0 : index
    %3 = vector.load %arg1[%c0_2, %c0_3, %c0_4] : memref<27x16x1xf32, #tpu.memory_space<vmem>>, vector<1x16x1xf32>
    %4 = vector.shape_cast %3 : vector<1x16x1xf32> to vector<16x1xf32>
    %5 = vector.shape_cast %4 : vector<16x1xf32> to vector<1x16x1xf32>
    %6 = vector.broadcast %2 : vector<2x1x256xf32> to vector<2x16x256xf32>
    %7 = vector.broadcast %5 : vector<1x16x1xf32> to vector<2x16x256xf32>
    %8 = arith.mulf %6, %7 : vector<2x16x256xf32>
    %9 = arith.addf %1, %8 : vector<2x16x256xf32>
    %10 = vector.extract_strided_slice %0 {offsets = [0, 1, 0], sizes = [2, 1, 256], strides = [1, 1, 1]} : vector<2x27x256xf32> to vector<2x1x256xf32>
    %c1 = arith.constant 1 : index
    %c0_5 = arith.constant 0 : index
    %c0_6 = arith.constant 0 : index
    %11 = vector.load %arg1[%c1, %c0_5, %c0_6] : memref<27x16x1xf32, #tpu.memory_space<vmem>>, vector<1x16x1xf32>
    %12 = vector.shape_cast %11 : vector<1x16x1xf32> to vector<16x1xf32>
    %13 = vector.shape_cast %12 : vector<16x1xf32> to vector<1x16x1xf32>
    %14 = vector.broadcast %10 : vector<2x1x256xf32> to vector<2x16x256xf32>
    %15 = vector.broadcast %13 : vector<1x16x1xf32> to vector<2x16x256xf32>
    %16 = arith.mulf %14, %15 : vector<2x16x256xf32>
    %17 = arith.addf %9, %16 : vector<2x16x256xf32>
    %18 = vector.extract_strided_slice %0 {offsets = [0, 2, 0], sizes = [2, 1, 256], strides = [1, 1, 1]} : vector<2x27x256xf32> to vector<2x1x256xf32>
    %c2 = arith.constant 2 : index
    %c0_7 = arith.constant 0 : index
    %c0_8 = arith.constant 0 : index
    %19 = vector.load %arg1[%c2, %c0_7, %c0_8] : memref<27x16x1xf32, #tpu.memory_space<vmem>>, vector<1x16x1xf32>
    %20 = vector.shape_cast %19 : vector<1x16x1xf32> to vector<16x1xf32>
    %21 = vector.shape_cast %20 : vector<16x1xf32> to vector<1x16x1xf32>
    %22 = vector.broadcast %18 : vector<2x1x256xf32> to vector<2x16x256xf32>
    %23 = vector.broadcast %21 : vector<1x16x1xf32> to vector<2x16x256xf32>
    %24 = arith.mulf %22, %23 : vector<2x16x256xf32>
    %25 = arith.addf %17, %24 : vector<2x16x256xf32>
    %26 = vector.extract_strided_slice %0 {offsets = [0, 3, 0], sizes = [2, 1, 256], strides = [1, 1, 1]} : vector<2x27x256xf32> to vector<2x1x256xf32>
    %c3 = arith.constant 3 : index
    %c0_9 = arith.constant 0 : index
    %c0_10 = arith.constant 0 : index
    %27 = vector.load %arg1[%c3, %c0_9, %c0_10] : memref<27x16x1xf32, #tpu.memory_space<vmem>>, vector<1x16x1xf32>
    %28 = vector.shape_cast %27 : vector<1x16x1xf32> to vector<16x1xf32>
    %29 = vector.shape_cast %28 : vector<16x1xf32> to vector<1x16x1xf32>
    %30 = vector.broadcast %26 : vector<2x1x256xf32> to vector<2x16x256xf32>
    %31 = vector.broadcast %29 : vector<1x16x1xf32> to vector<2x16x256xf32>
    %32 = arith.mulf %30, %31 : vector<2x16x256xf32>
    %33 = arith.addf %25, %32 : vector<2x16x256xf32>
    %34 = vector.extract_strided_slice %0 {offsets = [0, 4, 0], sizes = [2, 1, 256], strides = [1, 1, 1]} : vector<2x27x256xf32> to vector<2x1x256xf32>
    %c4 = arith.constant 4 : index
    %c0_11 = arith.constant 0 : index
    %c0_12 = arith.constant 0 : index
    %35 = vector.load %arg1[%c4, %c0_11, %c0_12] : memref<27x16x1xf32, #tpu.memory_space<vmem>>, vector<1x16x1xf32>
    %36 = vector.shape_cast %35 : vector<1x16x1xf32> to vector<16x1xf32>
    %37 = vector.shape_cast %36 : vector<16x1xf32> to vector<1x16x1xf32>
    %38 = vector.broadcast %34 : vector<2x1x256xf32> to vector<2x16x256xf32>
    %39 = vector.broadcast %37 : vector<1x16x1xf32> to vector<2x16x256xf32>
    %40 = arith.mulf %38, %39 : vector<2x16x256xf32>
    %41 = arith.addf %33, %40 : vector<2x16x256xf32>
    %42 = vector.extract_strided_slice %0 {offsets = [0, 5, 0], sizes = [2, 1, 256], strides = [1, 1, 1]} : vector<2x27x256xf32> to vector<2x1x256xf32>
    %c5 = arith.constant 5 : index
    %c0_13 = arith.constant 0 : index
    %c0_14 = arith.constant 0 : index
    %43 = vector.load %arg1[%c5, %c0_13, %c0_14] : memref<27x16x1xf32, #tpu.memory_space<vmem>>, vector<1x16x1xf32>
    %44 = vector.shape_cast %43 : vector<1x16x1xf32> to vector<16x1xf32>
    %45 = vector.shape_cast %44 : vector<16x1xf32> to vector<1x16x1xf32>
    %46 = vector.broadcast %42 : vector<2x1x256xf32> to vector<2x16x256xf32>
    %47 = vector.broadcast %45 : vector<1x16x1xf32> to vector<2x16x256xf32>
    %48 = arith.mulf %46, %47 : vector<2x16x256xf32>
    %49 = arith.addf %41, %48 : vector<2x16x256xf32>
    %50 = vector.extract_strided_slice %0 {offsets = [0, 6, 0], sizes = [2, 1, 256], strides = [1, 1, 1]} : vector<2x27x256xf32> to vector<2x1x256xf32>
    %c6 = arith.constant 6 : index
    %c0_15 = arith.constant 0 : index
    %c0_16 = arith.constant 0 : index
    %51 = vector.load %arg1[%c6, %c0_15, %c0_16] : memref<27x16x1xf32, #tpu.memory_space<vmem>>, vector<1x16x1xf32>
    %52 = vector.shape_cast %51 : vector<1x16x1xf32> to vector<16x1xf32>
    %53 = vector.shape_cast %52 : vector<16x1xf32> to vector<1x16x1xf32>
    %54 = vector.broadcast %50 : vector<2x1x256xf32> to vector<2x16x256xf32>
    %55 = vector.broadcast %53 : vector<1x16x1xf32> to vector<2x16x256xf32>
    %56 = arith.mulf %54, %55 : vector<2x16x256xf32>
    %57 = arith.addf %49, %56 : vector<2x16x256xf32>
    %58 = vector.extract_strided_slice %0 {offsets = [0, 7, 0], sizes = [2, 1, 256], strides = [1, 1, 1]} : vector<2x27x256xf32> to vector<2x1x256xf32>
    %c7 = arith.constant 7 : index
    %c0_17 = arith.constant 0 : index
    %c0_18 = arith.constant 0 : index
    %59 = vector.load %arg1[%c7, %c0_17, %c0_18] : memref<27x16x1xf32, #tpu.memory_space<vmem>>, vector<1x16x1xf32>
    %60 = vector.shape_cast %59 : vector<1x16x1xf32> to vector<16x1xf32>
    %61 = vector.shape_cast %60 : vector<16x1xf32> to vector<1x16x1xf32>
    %62 = vector.broadcast %58 : vector<2x1x256xf32> to vector<2x16x256xf32>
    %63 = vector.broadcast %61 : vector<1x16x1xf32> to vector<2x16x256xf32>
    %64 = arith.mulf %62, %63 : vector<2x16x256xf32>
    %65 = arith.addf %57, %64 : vector<2x16x256xf32>
    %66 = vector.extract_strided_slice %0 {offsets = [0, 8, 0], sizes = [2, 1, 256], strides = [1, 1, 1]} : vector<2x27x256xf32> to vector<2x1x256xf32>
    %c8 = arith.constant 8 : index
    %c0_19 = arith.constant 0 : index
    %c0_20 = arith.constant 0 : index
    %67 = vector.load %arg1[%c8, %c0_19, %c0_20] : memref<27x16x1xf32, #tpu.memory_space<vmem>>, vector<1x16x1xf32>
    %68 = vector.shape_cast %67 : vector<1x16x1xf32> to vector<16x1xf32>
    %69 = vector.shape_cast %68 : vector<16x1xf32> to vector<1x16x1xf32>
    %70 = vector.broadcast %66 : vector<2x1x256xf32> to vector<2x16x256xf32>
    %71 = vector.broadcast %69 : vector<1x16x1xf32> to vector<2x16x256xf32>
    %72 = arith.mulf %70, %71 : vector<2x16x256xf32>
    %73 = arith.addf %65, %72 : vector<2x16x256xf32>
    %74 = vector.extract_strided_slice %0 {offsets = [0, 9, 0], sizes = [2, 1, 256], strides = [1, 1, 1]} : vector<2x27x256xf32> to vector<2x1x256xf32>
    %c9 = arith.constant 9 : index
    %c0_21 = arith.constant 0 : index
    %c0_22 = arith.constant 0 : index
    %75 = vector.load %arg1[%c9, %c0_21, %c0_22] : memref<27x16x1xf32, #tpu.memory_space<vmem>>, vector<1x16x1xf32>
    %76 = vector.shape_cast %75 : vector<1x16x1xf32> to vector<16x1xf32>
    %77 = vector.shape_cast %76 : vector<16x1xf32> to vector<1x16x1xf32>
    %78 = vector.broadcast %74 : vector<2x1x256xf32> to vector<2x16x256xf32>
    %79 = vector.broadcast %77 : vector<1x16x1xf32> to vector<2x16x256xf32>
    %80 = arith.mulf %78, %79 : vector<2x16x256xf32>
    %81 = arith.addf %73, %80 : vector<2x16x256xf32>
    %82 = vector.extract_strided_slice %0 {offsets = [0, 10, 0], sizes = [2, 1, 256], strides = [1, 1, 1]} : vector<2x27x256xf32> to vector<2x1x256xf32>
    %c10 = arith.constant 10 : index
    %c0_23 = arith.constant 0 : index
    %c0_24 = arith.constant 0 : index
    %83 = vector.load %arg1[%c10, %c0_23, %c0_24] : memref<27x16x1xf32, #tpu.memory_space<vmem>>, vector<1x16x1xf32>
    %84 = vector.shape_cast %83 : vector<1x16x1xf32> to vector<16x1xf32>
    %85 = vector.shape_cast %84 : vector<16x1xf32> to vector<1x16x1xf32>
    %86 = vector.broadcast %82 : vector<2x1x256xf32> to vector<2x16x256xf32>
    %87 = vector.broadcast %85 : vector<1x16x1xf32> to vector<2x16x256xf32>
    %88 = arith.mulf %86, %87 : vector<2x16x256xf32>
    %89 = arith.addf %81, %88 : vector<2x16x256xf32>
    %90 = vector.extract_strided_slice %0 {offsets = [0, 11, 0], sizes = [2, 1, 256], strides = [1, 1, 1]} : vector<2x27x256xf32> to vector<2x1x256xf32>
    %c11 = arith.constant 11 : index
    %c0_25 = arith.constant 0 : index
    %c0_26 = arith.constant 0 : index
    %91 = vector.load %arg1[%c11, %c0_25, %c0_26] : memref<27x16x1xf32, #tpu.memory_space<vmem>>, vector<1x16x1xf32>
    %92 = vector.shape_cast %91 : vector<1x16x1xf32> to vector<16x1xf32>
    %93 = vector.shape_cast %92 : vector<16x1xf32> to vector<1x16x1xf32>
    %94 = vector.broadcast %90 : vector<2x1x256xf32> to vector<2x16x256xf32>
    %95 = vector.broadcast %93 : vector<1x16x1xf32> to vector<2x16x256xf32>
    %96 = arith.mulf %94, %95 : vector<2x16x256xf32>
    %97 = arith.addf %89, %96 : vector<2x16x256xf32>
    %98 = vector.extract_strided_slice %0 {offsets = [0, 12, 0], sizes = [2, 1, 256], strides = [1, 1, 1]} : vector<2x27x256xf32> to vector<2x1x256xf32>
    %c12 = arith.constant 12 : index
    %c0_27 = arith.constant 0 : index
    %c0_28 = arith.constant 0 : index
    %99 = vector.load %arg1[%c12, %c0_27, %c0_28] : memref<27x16x1xf32, #tpu.memory_space<vmem>>, vector<1x16x1xf32>
    %100 = vector.shape_cast %99 : vector<1x16x1xf32> to vector<16x1xf32>
    %101 = vector.shape_cast %100 : vector<16x1xf32> to vector<1x16x1xf32>
    %102 = vector.broadcast %98 : vector<2x1x256xf32> to vector<2x16x256xf32>
    %103 = vector.broadcast %101 : vector<1x16x1xf32> to vector<2x16x256xf32>
    %104 = arith.mulf %102, %103 : vector<2x16x256xf32>
    %105 = arith.addf %97, %104 : vector<2x16x256xf32>
    %106 = vector.extract_strided_slice %0 {offsets = [0, 13, 0], sizes = [2, 1, 256], strides = [1, 1, 1]} : vector<2x27x256xf32> to vector<2x1x256xf32>
    %c13 = arith.constant 13 : index
    %c0_29 = arith.constant 0 : index
    %c0_30 = arith.constant 0 : index
    %107 = vector.load %arg1[%c13, %c0_29, %c0_30] : memref<27x16x1xf32, #tpu.memory_space<vmem>>, vector<1x16x1xf32>
    %108 = vector.shape_cast %107 : vector<1x16x1xf32> to vector<16x1xf32>
    %109 = vector.shape_cast %108 : vector<16x1xf32> to vector<1x16x1xf32>
    %110 = vector.broadcast %106 : vector<2x1x256xf32> to vector<2x16x256xf32>
    %111 = vector.broadcast %109 : vector<1x16x1xf32> to vector<2x16x256xf32>
    %112 = arith.mulf %110, %111 : vector<2x16x256xf32>
    %113 = arith.addf %105, %112 : vector<2x16x256xf32>
    %114 = vector.extract_strided_slice %0 {offsets = [0, 14, 0], sizes = [2, 1, 256], strides = [1, 1, 1]} : vector<2x27x256xf32> to vector<2x1x256xf32>
    %c14 = arith.constant 14 : index
    %c0_31 = arith.constant 0 : index
    %c0_32 = arith.constant 0 : index
    %115 = vector.load %arg1[%c14, %c0_31, %c0_32] : memref<27x16x1xf32, #tpu.memory_space<vmem>>, vector<1x16x1xf32>
    %116 = vector.shape_cast %115 : vector<1x16x1xf32> to vector<16x1xf32>
    %117 = vector.shape_cast %116 : vector<16x1xf32> to vector<1x16x1xf32>
    %118 = vector.broadcast %114 : vector<2x1x256xf32> to vector<2x16x256xf32>
    %119 = vector.broadcast %117 : vector<1x16x1xf32> to vector<2x16x256xf32>
    %120 = arith.mulf %118, %119 : vector<2x16x256xf32>
    %121 = arith.addf %113, %120 : vector<2x16x256xf32>
    %122 = vector.extract_strided_slice %0 {offsets = [0, 15, 0], sizes = [2, 1, 256], strides = [1, 1, 1]} : vector<2x27x256xf32> to vector<2x1x256xf32>
    %c15 = arith.constant 15 : index
    %c0_33 = arith.constant 0 : index
    %c0_34 = arith.constant 0 : index
    %123 = vector.load %arg1[%c15, %c0_33, %c0_34] : memref<27x16x1xf32, #tpu.memory_space<vmem>>, vector<1x16x1xf32>
    %124 = vector.shape_cast %123 : vector<1x16x1xf32> to vector<16x1xf32>
    %125 = vector.shape_cast %124 : vector<16x1xf32> to vector<1x16x1xf32>
    %126 = vector.broadcast %122 : vector<2x1x256xf32> to vector<2x16x256xf32>
    %127 = vector.broadcast %125 : vector<1x16x1xf32> to vector<2x16x256xf32>
    %128 = arith.mulf %126, %127 : vector<2x16x256xf32>
    %129 = arith.addf %121, %128 : vector<2x16x256xf32>
    %130 = vector.extract_strided_slice %0 {offsets = [0, 16, 0], sizes = [2, 1, 256], strides = [1, 1, 1]} : vector<2x27x256xf32> to vector<2x1x256xf32>
    %c16 = arith.constant 16 : index
    %c0_35 = arith.constant 0 : index
    %c0_36 = arith.constant 0 : index
    %131 = vector.load %arg1[%c16, %c0_35, %c0_36] : memref<27x16x1xf32, #tpu.memory_space<vmem>>, vector<1x16x1xf32>
    %132 = vector.shape_cast %131 : vector<1x16x1xf32> to vector<16x1xf32>
    %133 = vector.shape_cast %132 : vector<16x1xf32> to vector<1x16x1xf32>
    %134 = vector.broadcast %130 : vector<2x1x256xf32> to vector<2x16x256xf32>
    %135 = vector.broadcast %133 : vector<1x16x1xf32> to vector<2x16x256xf32>
    %136 = arith.mulf %134, %135 : vector<2x16x256xf32>
    %137 = arith.addf %129, %136 : vector<2x16x256xf32>
    %138 = vector.extract_strided_slice %0 {offsets = [0, 17, 0], sizes = [2, 1, 256], strides = [1, 1, 1]} : vector<2x27x256xf32> to vector<2x1x256xf32>
    %c17 = arith.constant 17 : index
    %c0_37 = arith.constant 0 : index
    %c0_38 = arith.constant 0 : index
    %139 = vector.load %arg1[%c17, %c0_37, %c0_38] : memref<27x16x1xf32, #tpu.memory_space<vmem>>, vector<1x16x1xf32>
    %140 = vector.shape_cast %139 : vector<1x16x1xf32> to vector<16x1xf32>
    %141 = vector.shape_cast %140 : vector<16x1xf32> to vector<1x16x1xf32>
    %142 = vector.broadcast %138 : vector<2x1x256xf32> to vector<2x16x256xf32>
    %143 = vector.broadcast %141 : vector<1x16x1xf32> to vector<2x16x256xf32>
    %144 = arith.mulf %142, %143 : vector<2x16x256xf32>
    %145 = arith.addf %137, %144 : vector<2x16x256xf32>
    %146 = vector.extract_strided_slice %0 {offsets = [0, 18, 0], sizes = [2, 1, 256], strides = [1, 1, 1]} : vector<2x27x256xf32> to vector<2x1x256xf32>
    %c18 = arith.constant 18 : index
    %c0_39 = arith.constant 0 : index
    %c0_40 = arith.constant 0 : index
    %147 = vector.load %arg1[%c18, %c0_39, %c0_40] : memref<27x16x1xf32, #tpu.memory_space<vmem>>, vector<1x16x1xf32>
    %148 = vector.shape_cast %147 : vector<1x16x1xf32> to vector<16x1xf32>
    %149 = vector.shape_cast %148 : vector<16x1xf32> to vector<1x16x1xf32>
    %150 = vector.broadcast %146 : vector<2x1x256xf32> to vector<2x16x256xf32>
    %151 = vector.broadcast %149 : vector<1x16x1xf32> to vector<2x16x256xf32>
    %152 = arith.mulf %150, %151 : vector<2x16x256xf32>
    %153 = arith.addf %145, %152 : vector<2x16x256xf32>
    %154 = vector.extract_strided_slice %0 {offsets = [0, 19, 0], sizes = [2, 1, 256], strides = [1, 1, 1]} : vector<2x27x256xf32> to vector<2x1x256xf32>
    %c19 = arith.constant 19 : index
    %c0_41 = arith.constant 0 : index
    %c0_42 = arith.constant 0 : index
    %155 = vector.load %arg1[%c19, %c0_41, %c0_42] : memref<27x16x1xf32, #tpu.memory_space<vmem>>, vector<1x16x1xf32>
    %156 = vector.shape_cast %155 : vector<1x16x1xf32> to vector<16x1xf32>
    %157 = vector.shape_cast %156 : vector<16x1xf32> to vector<1x16x1xf32>
    %158 = vector.broadcast %154 : vector<2x1x256xf32> to vector<2x16x256xf32>
    %159 = vector.broadcast %157 : vector<1x16x1xf32> to vector<2x16x256xf32>
    %160 = arith.mulf %158, %159 : vector<2x16x256xf32>
    %161 = arith.addf %153, %160 : vector<2x16x256xf32>
    %162 = vector.extract_strided_slice %0 {offsets = [0, 20, 0], sizes = [2, 1, 256], strides = [1, 1, 1]} : vector<2x27x256xf32> to vector<2x1x256xf32>
    %c20 = arith.constant 20 : index
    %c0_43 = arith.constant 0 : index
    %c0_44 = arith.constant 0 : index
    %163 = vector.load %arg1[%c20, %c0_43, %c0_44] : memref<27x16x1xf32, #tpu.memory_space<vmem>>, vector<1x16x1xf32>
    %164 = vector.shape_cast %163 : vector<1x16x1xf32> to vector<16x1xf32>
    %165 = vector.shape_cast %164 : vector<16x1xf32> to vector<1x16x1xf32>
    %166 = vector.broadcast %162 : vector<2x1x256xf32> to vector<2x16x256xf32>
    %167 = vector.broadcast %165 : vector<1x16x1xf32> to vector<2x16x256xf32>
    %168 = arith.mulf %166, %167 : vector<2x16x256xf32>
    %169 = arith.addf %161, %168 : vector<2x16x256xf32>
    %170 = vector.extract_strided_slice %0 {offsets = [0, 21, 0], sizes = [2, 1, 256], strides = [1, 1, 1]} : vector<2x27x256xf32> to vector<2x1x256xf32>
    %c21 = arith.constant 21 : index
    %c0_45 = arith.constant 0 : index
    %c0_46 = arith.constant 0 : index
    %171 = vector.load %arg1[%c21, %c0_45, %c0_46] : memref<27x16x1xf32, #tpu.memory_space<vmem>>, vector<1x16x1xf32>
    %172 = vector.shape_cast %171 : vector<1x16x1xf32> to vector<16x1xf32>
    %173 = vector.shape_cast %172 : vector<16x1xf32> to vector<1x16x1xf32>
    %174 = vector.broadcast %170 : vector<2x1x256xf32> to vector<2x16x256xf32>
    %175 = vector.broadcast %173 : vector<1x16x1xf32> to vector<2x16x256xf32>
    %176 = arith.mulf %174, %175 : vector<2x16x256xf32>
    %177 = arith.addf %169, %176 : vector<2x16x256xf32>
    %178 = vector.extract_strided_slice %0 {offsets = [0, 22, 0], sizes = [2, 1, 256], strides = [1, 1, 1]} : vector<2x27x256xf32> to vector<2x1x256xf32>
    %c22 = arith.constant 22 : index
    %c0_47 = arith.constant 0 : index
    %c0_48 = arith.constant 0 : index
    %179 = vector.load %arg1[%c22, %c0_47, %c0_48] : memref<27x16x1xf32, #tpu.memory_space<vmem>>, vector<1x16x1xf32>
    %180 = vector.shape_cast %179 : vector<1x16x1xf32> to vector<16x1xf32>
    %181 = vector.shape_cast %180 : vector<16x1xf32> to vector<1x16x1xf32>
    %182 = vector.broadcast %178 : vector<2x1x256xf32> to vector<2x16x256xf32>
    %183 = vector.broadcast %181 : vector<1x16x1xf32> to vector<2x16x256xf32>
    %184 = arith.mulf %182, %183 : vector<2x16x256xf32>
    %185 = arith.addf %177, %184 : vector<2x16x256xf32>
    %186 = vector.extract_strided_slice %0 {offsets = [0, 23, 0], sizes = [2, 1, 256], strides = [1, 1, 1]} : vector<2x27x256xf32> to vector<2x1x256xf32>
    %c23 = arith.constant 23 : index
    %c0_49 = arith.constant 0 : index
    %c0_50 = arith.constant 0 : index
    %187 = vector.load %arg1[%c23, %c0_49, %c0_50] : memref<27x16x1xf32, #tpu.memory_space<vmem>>, vector<1x16x1xf32>
    %188 = vector.shape_cast %187 : vector<1x16x1xf32> to vector<16x1xf32>
    %189 = vector.shape_cast %188 : vector<16x1xf32> to vector<1x16x1xf32>
    %190 = vector.broadcast %186 : vector<2x1x256xf32> to vector<2x16x256xf32>
    %191 = vector.broadcast %189 : vector<1x16x1xf32> to vector<2x16x256xf32>
    %192 = arith.mulf %190, %191 : vector<2x16x256xf32>
    %193 = arith.addf %185, %192 : vector<2x16x256xf32>
    %194 = vector.extract_strided_slice %0 {offsets = [0, 24, 0], sizes = [2, 1, 256], strides = [1, 1, 1]} : vector<2x27x256xf32> to vector<2x1x256xf32>
    %c24 = arith.constant 24 : index
    %c0_51 = arith.constant 0 : index
    %c0_52 = arith.constant 0 : index
    %195 = vector.load %arg1[%c24, %c0_51, %c0_52] : memref<27x16x1xf32, #tpu.memory_space<vmem>>, vector<1x16x1xf32>
    %196 = vector.shape_cast %195 : vector<1x16x1xf32> to vector<16x1xf32>
    %197 = vector.shape_cast %196 : vector<16x1xf32> to vector<1x16x1xf32>
    %198 = vector.broadcast %194 : vector<2x1x256xf32> to vector<2x16x256xf32>
    %199 = vector.broadcast %197 : vector<1x16x1xf32> to vector<2x16x256xf32>
    %200 = arith.mulf %198, %199 : vector<2x16x256xf32>
    %201 = arith.addf %193, %200 : vector<2x16x256xf32>
    %202 = vector.extract_strided_slice %0 {offsets = [0, 25, 0], sizes = [2, 1, 256], strides = [1, 1, 1]} : vector<2x27x256xf32> to vector<2x1x256xf32>
    %c25 = arith.constant 25 : index
    %c0_53 = arith.constant 0 : index
    %c0_54 = arith.constant 0 : index
    %203 = vector.load %arg1[%c25, %c0_53, %c0_54] : memref<27x16x1xf32, #tpu.memory_space<vmem>>, vector<1x16x1xf32>
    %204 = vector.shape_cast %203 : vector<1x16x1xf32> to vector<16x1xf32>
    %205 = vector.shape_cast %204 : vector<16x1xf32> to vector<1x16x1xf32>
    %206 = vector.broadcast %202 : vector<2x1x256xf32> to vector<2x16x256xf32>
    %207 = vector.broadcast %205 : vector<1x16x1xf32> to vector<2x16x256xf32>
    %208 = arith.mulf %206, %207 : vector<2x16x256xf32>
    %209 = arith.addf %201, %208 : vector<2x16x256xf32>
    %210 = vector.extract_strided_slice %0 {offsets = [0, 26, 0], sizes = [2, 1, 256], strides = [1, 1, 1]} : vector<2x27x256xf32> to vector<2x1x256xf32>
    %c26 = arith.constant 26 : index
    %c0_55 = arith.constant 0 : index
    %c0_56 = arith.constant 0 : index
    %211 = vector.load %arg1[%c26, %c0_55, %c0_56] : memref<27x16x1xf32, #tpu.memory_space<vmem>>, vector<1x16x1xf32>
    %212 = vector.shape_cast %211 : vector<1x16x1xf32> to vector<16x1xf32>
    %213 = vector.shape_cast %212 : vector<16x1xf32> to vector<1x16x1xf32>
    %214 = vector.broadcast %210 : vector<2x1x256xf32> to vector<2x16x256xf32>
    %215 = vector.broadcast %213 : vector<1x16x1xf32> to vector<2x16x256xf32>
    %216 = arith.mulf %214, %215 : vector<2x16x256xf32>
    %217 = arith.addf %209, %216 : vector<2x16x256xf32>
    %c0_57 = arith.constant 0 : index
    %c0_58 = arith.constant 0 : index
    %218 = vector.load %arg2[%c0_57, %c0_58] : memref<16x1xf32, #tpu.memory_space<vmem>>, vector<16x1xf32>
    %219 = vector.shape_cast %218 : vector<16x1xf32> to vector<1x16x1xf32>
    %220 = vector.broadcast %219 : vector<1x16x1xf32> to vector<2x16x256xf32>
    %221 = arith.addf %217, %220 : vector<2x16x256xf32>
    %cst_59 = arith.constant 0.000000e+00 : f32
    %222 = vector.broadcast %cst_59 : f32 to vector<2x16x256xf32>
    %223 = arith.maximumf %221, %222 : vector<2x16x256xf32>
    %c0_60 = arith.constant 0 : index
    %c0_61 = arith.constant 0 : index
    %c0_62 = arith.constant 0 : index
    %224 = vector.load %arg3[%c0_60, %c0_61, %c0_62] : memref<2x16x256xf32, #tpu.memory_space<vmem>>, vector<2x16x256xf32>
    %225 = vector.shape_cast %223 : vector<2x16x256xf32> to vector<2x1x16x256xf32>
    %226 = vector.shape_cast %224 : vector<2x16x256xf32> to vector<1x2x16x256xf32>
    %227 = vector.broadcast %225 : vector<2x1x16x256xf32> to vector<2x2x16x256xf32>
    %228 = vector.broadcast %226 : vector<1x2x16x256xf32> to vector<2x2x16x256xf32>
    %229 = arith.mulf %227, %228 : vector<2x2x16x256xf32>
    %cst_63 = arith.constant dense<0.000000e+00> : vector<2x2x16xf32>
    %230 = vector.multi_reduction <add>, %229, %cst_63 [3] : vector<2x2x16x256xf32> to vector<2x2x16xf32>
    %cst_64 = arith.constant dense<0.000000e+00> : vector<2x2xf32>
    %231 = vector.multi_reduction <add>, %230, %cst_64 [2] : vector<2x2x16xf32> to vector<2x2xf32>
    %c0_65 = arith.constant 0 : index
    %c0_66 = arith.constant 0 : index
    %232 = vector.load %arg4[%c0_65, %c0_66] : memref<1x2xf32, #tpu.memory_space<vmem>>, vector<1x2xf32>
    %233 = vector.broadcast %232 : vector<1x2xf32> to vector<2x2xf32>
    %234 = arith.addf %231, %233 : vector<2x2xf32>
    %c0_67 = arith.constant 0 : index
    %c0_68 = arith.constant 0 : index
    %235 = vector.load %arg5[%c0_67, %c0_68] : memref<2x2xf32, #tpu.memory_space<vmem>>, vector<2x2xf32>
    tpu.vector_store %arg5[%c0_67, %c0_68], %234 {strides = array<i32>} : memref<2x2xf32, #tpu.memory_space<vmem>>, vector<2x2xf32>,
    return
  }
}

</mosaic_0001>

<bundles_post_ra>
// kernel: spoof_neural_net_forward.1
= control target key start
LH: loop header
LB: loop body
LE: loop exit
PB: predicated region body
PF: predicated region fallthrough
CT: control target
= control target key end

     0   :  { %v1512_v2 = vmov 0   ;;  %s2369_s0 = inlined_call_operand.vmem [shape: f32[2,27,256], index: 0, kind: input, shape index: {}]   ;;  %s2370_s1 = inlined_call_operand.vmem [shape: f32[27,16,1], index: 1, kind: input, shape index: {}]   ;;  %s2371_s2 = inlined_call_operand.vmem [shape: f32[16,1], index: 2, kind: input, shape index: {}]   ;;  %s2372_s3 = inlined_call_operand.vmem [shape: f32[2,16,256], index: 3, kind: input, shape index: {}]   ;;  %s2373_s4 = inlined_call_operand.vmem [shape: f32[1,2], index: 4, kind: input, shape index: {}]   ;;  %s2374_s5 = inlined_call_operand.hbm [shape: f32[2,2], index: 5, kind: output, shape index: {}]  }
   0x1   :  { %v1433_v0 = vld [vmem:[%s2370_s1 + $0x10] sm:$0xff]  ;;  %v37_v1 = vld [vmem:[%s2370_s1] sm:$0xff]  ;;  %1489 = vset.pattern.permute.xlu1 %v1512_v2  ;;  %1488 = vset.pattern.permute.xlu0 %v1512_v2  ;;  %v1434_v3 = vld [vmem:[%s2370_s1 + $0x18] sm:$0xff] }
   0x2   :  { %102 = vperm.xlu1 %1489, %v1433_v0   ;;  %57 = vperm.xlu0 %1488, %v37_v1   ;;  %v38_v4 = vld [vmem:[%s2370_s1 + $0x8] sm:$0xff]  ;;  %v1435_v6 = vld [vmem:[%s2370_s1 + $0x20] sm:$0xff]  ;;  %v1438_v7 = vld [vmem:[%s2370_s1 + $0x38] sm:$0xff] }
   0x3   :  { %v1436_v5 = vld [vmem:[%s2370_s1 + $0x28] sm:$0xff]  ;;  %v1437_v8 = vld [vmem:[%s2370_s1 + $0x30] sm:$0xff]  ;;  %v1439_v10 = vld [vmem:[%s2370_s1 + $0x40] sm:$0xff] }
   0x4   :  { %v1440_v9 = vld [vmem:[%s2370_s1 + $0x48] sm:$0xff]  ;;  %v1442_v11 = vld [vmem:[%s2370_s1 + $0x58] sm:$0xff]  ;;  %v1441_v12 = vld [vmem:[%s2370_s1 + $0x50] sm:$0xff] }
   0x6   :  { %107 = vperm.xlu1 %1489, %v1434_v3   ;;  %62 = vperm.xlu0 %1488, %v38_v4  }
   0xa   :  { %152 = vperm.xlu1 %1489, %v1436_v5   ;;  %147 = vperm.xlu0 %1488, %v1435_v6  }
   0xe   :  { %197 = vperm.xlu1 %1489, %v1438_v7   ;;  %192 = vperm.xlu0 %1488, %v1437_v8  }
  0x12   :  { %242 = vperm.xlu1 %1489, %v1440_v9   ;;  %237 = vperm.xlu0 %1488, %v1439_v10  }
  0x13   :  { %10 = vsyncpa [#allocation3], 0  ;;  %v1444_v13 = vld [vmem:[%s2370_s1 + $0x68] sm:$0xff]  ;;  %v1443_v14 = vld [vmem:[%s2370_s1 + $0x60] sm:$0xff]  ;;  %v2375_v47 = vlaneseq  ;;  %vm1346_vm0 = vcmask 130112   ;;  %vm1375_vm1 = vcmask 1041409  }
  0x14   :  { %v1446_v15 = vld [vmem:[%s2370_s1 + $0x78] sm:$0xff]  ;;  %v1445_v16 = vld [vmem:[%s2370_s1 + $0x70] sm:$0xff]  ;;  %v1448_v17 = vld [vmem:[%s2370_s1 + $0x88] sm:$0xff]  ;;  %vm1380_vm2 = vcmask 123904   ;;  %s1513_s24 = smov [#allocation2]   ;;  %vm1417_vm3 = vcmask 9216  }
  0x15   :  { %v1447_v18 = vld [vmem:[%s2370_s1 + $0x80] sm:$0xff]  ;;  %v1450_v19 = vld [vmem:[%s2370_s1 + $0x98] sm:$0xff]  ;;  %v1449_v20 = vld [vmem:[%s2370_s1 + $0x90] sm:$0xff]  ;;  %v1689_v50 = vshrl.u32 %v2375_v47, 7  ;;  %s1425_s25 = sshll.u32 %s1513_s24, 4  ;;  %s1426_s25 = int_to_ptr.vmem [resolvable:$true] %s1425_s25 }
  0x16   :  { %287 = vperm.xlu1 %1489, %v1442_v11   ;;  %282 = vperm.xlu0 %1488, %v1441_v12   ;;  %v1452_v21 = vld [vmem:[%s2370_s1 + $0xa8] sm:$0xff]  ;;  %v1451_v22 = vld [vmem:[%s2370_s1 + $0xa0] sm:$0xff]  ;;  %v1454_v23 = vld [vmem:[%s2370_s1 + $0xb8] sm:$0xff]  ;;  %p1495_p1 = scmp.lt.s32.totalorder %s1426_s25, %s1426_s25 }
  0x17   :  { %v1453_v24 = vld [vmem:[%s2370_s1 + $0xb0] sm:$0xff]  ;;  %v1456_v25 = vld [vmem:[%s2370_s1 + $0xc8] sm:$0xff]  ;;  %v1455_v26 = vld [vmem:[%s2370_s1 + $0xc0] sm:$0xff]  ;;  %2446 = vst [vmem:[#allocation5_spill] sm:$0xff] %v1689_v50  ;;  %v1698_v53 = vsub.s32 1, %v1689_v50  ;;  %v1704_v55 = vsub.s32 0, %v1689_v50 }
  0x18   :  { %v1458_v27 = vld [vmem:[%s2370_s1 + $0xd8] sm:$0xff]  ;;  %v1457_v28 = vld [vmem:[%s2370_s1 + $0xd0] sm:$0xff]  ;;  %v1460_v29 = vld [vmem:[%s2370_s1 + $0xe8] sm:$0xff]  ;;  %v1707_v56 = vsub.s32 2, %v1689_v50  ;;  %v1710_v57 = vsub.s32 3, %v1689_v50  ;;  %v1731_v0 = vsub.s32 4, %v1689_v50 }
  0x19   :  { %v1459_v30 = vld [vmem:[%s2370_s1 + $0xe0] sm:$0xff]  ;;  %v1462_v31 = vld [vmem:[%s2370_s1 + $0xf8] sm:$0xff]  ;;  %v1461_v32 = vld [vmem:[%s2370_s1 + $0xf0] sm:$0xff]  ;;  %v1755_v8 = vsub.s32 5, %v1689_v50 }
  0x1a   :  { %332 = vperm.xlu1 %1489, %v1444_v13   ;;  %327 = vperm.xlu0 %1488, %v1443_v14   ;;  %v1464_v33 = vld [vmem:[%s2370_s1 + $0x108] sm:$0xff]  ;;  %v1463_v34 = vld [vmem:[%s2370_s1 + $0x100] sm:$0xff]  ;;  %v1466_v35 = vld [vmem:[%s2370_s1 + $0x118] sm:$0xff]  ;;  %v1773_v14 = vsub.s32 6, %v1689_v50 }
  0x1b   :  { %v1465_v36 = vld [vmem:[%s2370_s1 + $0x110] sm:$0xff]  ;;  %v1468_v37 = vld [vmem:[%s2370_s1 + $0x128] sm:$0xff]  ;;  %v1467_v38 = vld [vmem:[%s2370_s1 + $0x120] sm:$0xff] }
  0x1c   :  { %v1470_v39 = vld [vmem:[%s2370_s1 + $0x138] sm:$0xff]  ;;  %v1469_v40 = vld [vmem:[%s2370_s1 + $0x130] sm:$0xff]  ;;  %v1472_v41 = vld [vmem:[%s2370_s1 + $0x148] sm:$0xff] }
  0x1d   :  { %v1471_v42 = vld [vmem:[%s2370_s1 + $0x140] sm:$0xff]  ;;  %v1474_v43 = vld [vmem:[%s2370_s1 + $0x158] sm:$0xff]  ;;  %v1473_v44 = vld [vmem:[%s2370_s1 + $0x150] sm:$0xff] }
  0x1e   :  { %377 = vperm.xlu1 %1489, %v1446_v15   ;;  %372 = vperm.xlu0 %1488, %v1445_v16   ;;  %v1476_v45 = vld [vmem:[%s2370_s1 + $0x168] sm:$0xff]  ;;  %v1475_v46 = vld [vmem:[%s2370_s1 + $0x160] sm:$0xff]  ;;  %v1478_v48 = vld [vmem:[%s2370_s1 + $0x178] sm:$0xff] }
  0x1f   :  { %v1477_v49 = vld [vmem:[%s2370_s1 + $0x170] sm:$0xff]  ;;  %v1480_v51 = vld [vmem:[%s2370_s1 + $0x188] sm:$0xff]  ;;  %v1479_v52 = vld [vmem:[%s2370_s1 + $0x180] sm:$0xff] }
  0x20   :  { %v21_v54 = vld [vmem:[%s2369_s0] sm:$0xff]  ;;  %v1482_v58 = vld [vmem:[%s2370_s1 + $0x198] sm:$0xff]  ;;  %v22_v59 = vld [vmem:[%s2369_s0 + $0x8] sm:$0xff] }
  0x21   :  { %v1481_v60 = vld [vmem:[%s2370_s1 + $0x190] sm:$0xff]  ;;  %v29_v61 = vld [vmem:[%s2369_s0 + $0x40] sm:$0xff]  ;;  %v30_v62 = vld [vmem:[%s2369_s0 + $0x48] sm:$0xff]  ;;  %v1728_v63 = vrot.slane %v21_v54, %v1698_v53  ;;  %v1734_v1 = vrot.slane %v22_v59, %v1698_v53  ;;  %v1737_v2 = vrot.slane %v21_v54, %v1704_v55  ;;  %v1740_v3 = vrot.slane %v21_v54, %v1707_v56 }
  0x22   :  { %422 = vperm.xlu1 %1489, %v1448_v17   ;;  %417 = vperm.xlu0 %1488, %v1447_v18   ;;  %v1743_v4 = vrot.slane %v21_v54, %v1710_v57  ;;  %v1746_v5 = vrot.slane %v29_v61, %v1698_v53  ;;  %v1749_v6 = vrot.slane %v30_v62, %v1698_v53  ;;  %v1484_v9 = vld [vmem:[%s2370_s1 + $0x1a8] sm:$0xff]  ;;  %v1483_v10 = vld [vmem:[%s2370_s1 + $0x1a0] sm:$0xff]  ;;  %v1785_v18 = vsub.s32 7, %v1689_v50 }
  0x23   :  { %v1752_v7 = vrot.slane %v22_v59, %v1704_v55  ;;  %v1764_v11 = vrot.slane %v29_v61, %v1704_v55  ;;  %v1767_v12 = vrot.slane %v30_v62, %v1704_v55  ;;  %v1770_v13 = vrot.slane %v22_v59, %v1707_v56 }
  0x24   :  { %v1776_v15 = vrot.slane %v29_v61, %v1707_v56  ;;  %v1779_v16 = vrot.slane %v30_v62, %v1707_v56  ;;  %v1782_v17 = vrot.slane %v22_v59, %v1710_v57 }
  0x26   :  { %467 = vperm.xlu1 %1489, %v1450_v19   ;;  %462 = vperm.xlu0 %1488, %v1449_v20   ;;  %v1788_v19 = vrot.slane %v29_v61, %v1710_v57  ;;  %v1791_v20 = vrot.slane %v30_v62, %v1710_v57 }
  0x2a   :  { %512 = vperm.xlu1 %1489, %v1452_v21   ;;  %507 = vperm.xlu0 %1488, %v1451_v22   ;;  %v1794_v21 = vrot.slane %v21_v54, %v1731_v0  ;;  %v1797_v22 = vrot.slane %v22_v59, %v1731_v0 }
  0x2e   :  { %557 = vperm.xlu1 %1489, %v1454_v23   ;;  %552 = vperm.xlu0 %1488, %v1453_v24   ;;  %v1252_v23 = vld [vmem:[%s2371_s2 + $0x8] sm:$0xff]  ;;  %v1251_v24 = vld [vmem:[%s2371_s2] sm:$0xff] }
  0x32   :  { %602 = vperm.xlu1 %1489, %v1456_v25   ;;  %597 = vperm.xlu0 %1488, %v1455_v26   ;;  %v1806_v25 = vrot.slane %v29_v61, %v1731_v0  ;;  %v1809_v26 = vrot.slane %v30_v62, %v1731_v0 }
  0x36   :  { %647 = vperm.xlu1 %1489, %v1458_v27   ;;  %642 = vperm.xlu0 %1488, %v1457_v28   ;;  %v1812_v27 = vrot.slane %v21_v54, %v1755_v8  ;;  %v23_v28 = vld [vmem:[%s2369_s0 + $0x10] sm:$0xff] }
  0x3a   :  { %692 = vperm.xlu1 %1489, %v1460_v29   ;;  %687 = vperm.xlu0 %1488, %v1459_v30   ;;  %v1818_v29 = vrot.slane %v22_v59, %v1755_v8  ;;  %v1821_v30 = vrot.slane %v29_v61, %v1755_v8 }
  0x3e   :  { %737 = vperm.xlu1 %1489, %v1462_v31   ;;  %732 = vperm.xlu0 %1488, %v1461_v32   ;;  %v1824_v31 = vrot.slane %v30_v62, %v1755_v8  ;;  %v1827_v32 = vrot.slane %v21_v54, %v1773_v14 }
  0x42   :  { %782 = vperm.xlu1 %1489, %v1464_v33   ;;  %777 = vperm.xlu0 %1488, %v1463_v34   ;;  %v24_v33 = vld [vmem:[%s2369_s0 + $0x18] sm:$0xff]  ;;  %v31_v34 = vld [vmem:[%s2369_s0 + $0x50] sm:$0xff] }
  0x43   :  { %v1914_v47 = vrot.slane %v31_v34, %v1731_v0 }
  0x45   :  { %2457 = vst [vmem:[#allocation16_spill] sm:$0xff] %v1914_v47  ;;  %v33_v47 = vld [vmem:[%s2369_s0 + $0x60] sm:$0xff] }
  0x46   :  { %827 = vperm.xlu1 %1489, %v1466_v35   ;;  %822 = vperm.xlu0 %1488, %v1465_v36   ;;  %v32_v35 = vld [vmem:[%s2369_s0 + $0x58] sm:$0xff]  ;;  %v1839_v36 = vrot.slane %v22_v59, %v1773_v14 }
  0x47   :  { %v1917_v50 = vrot.slane %v32_v35, %v1731_v0 }
  0x49   :  { %2458 = vst [vmem:[#allocation17_spill] sm:$0xff] %v1917_v50  ;;  %v26_v50 = vld [vmem:[%s2369_s0 + $0x28] sm:$0xff] }
  0x4a   :  { %872 = vperm.xlu1 %1489, %v1468_v37   ;;  %867 = vperm.xlu0 %1488, %v1467_v38   ;;  %v1842_v37 = vrot.slane %v29_v61, %v1773_v14  ;;  %v1845_v38 = vrot.slane %v30_v62, %v1773_v14 }
  0x4e   :  { %917 = vperm.xlu1 %1489, %v1470_v39   ;;  %912 = vperm.xlu0 %1488, %v1469_v40   ;;  %v1848_v39 = vrot.slane %v21_v54, %v1785_v18  ;;  %v1851_v40 = vrot.slane %v22_v59, %v1785_v18  ;;  %v1884_v54 = vrot.slane %v23_v28, %v1707_v56 }
  0x4f   :  { %v1890_v59 = vrot.slane %v31_v34, %v1707_v56 }
  0x50   :  { %2447 = vst [vmem:[#allocation6_spill] sm:$0xff] %v1884_v54 }
  0x51   :  { %2449 = vst [vmem:[#allocation8_spill] sm:$0xff] %v1890_v59  ;;  %v1959_v59 = vrot.slane %v24_v33, %v1785_v18 }
  0x52   :  { %962 = vperm.xlu1 %1489, %v1472_v41   ;;  %957 = vperm.xlu0 %1488, %v1471_v42   ;;  %v1854_v41 = vrot.slane %v29_v61, %v1785_v18  ;;  %v1857_v42 = vrot.slane %v30_v62, %v1785_v18  ;;  %v1896_v61 = vrot.slane %v23_v28, %v1710_v57 }
  0x53   :  { %v1899_v62 = vrot.slane %v24_v33, %v1710_v57  ;;  %2468 = vst [vmem:[#allocation27_spill] sm:$0xff] %v1959_v59  ;;  %v2070_v59 = vrot.slane %v33_v47, %v1785_v18 }
  0x54   :  { %2451 = vst [vmem:[#allocation10_spill] sm:$0xff] %v1896_v61  ;;  %v1953_v61 = vrot.slane %v32_v35, %v1773_v14 }
  0x55   :  { %2452 = vst [vmem:[#allocation11_spill] sm:$0xff] %v1899_v62  ;;  %v25_v62 = vld [vmem:[%s2369_s0 + $0x20] sm:$0xff]  ;;  %2501 = vst [vmem:[#allocation60_spill] sm:$0xff] %v2070_v59 }
  0x56   :  { %1007 = vperm.xlu1 %1489, %v1474_v43   ;;  %1002 = vperm.xlu0 %1488, %v1473_v44   ;;  %v1860_v43 = vrot.slane %v23_v28, %v1704_v55  ;;  %v1863_v44 = vrot.slane %v24_v33, %v1704_v55  ;;  %2466 = vst [vmem:[#allocation25_spill] sm:$0xff] %v1953_v61 }
  0x57   :  { %v1974_v61 = vrot.slane %v33_v47, %v1704_v55 }
  0x59   :  { %2473 = vst [vmem:[#allocation32_spill] sm:$0xff] %v1974_v61  ;;  %v1995_v61 = vrot.slane %v26_v50, %v1707_v56 }
  0x5a   :  { %1052 = vperm.xlu1 %1489, %v1476_v45   ;;  %1047 = vperm.xlu0 %1488, %v1475_v46   ;;  %v1866_v45 = vrot.slane %v31_v34, %v1704_v55  ;;  %v1869_v46 = vrot.slane %v32_v35, %v1704_v55 }
  0x5b   :  { %2480 = vst [vmem:[#allocation39_spill] sm:$0xff] %v1995_v61  ;;  %v2016_v61 = vrot.slane %v25_v62, %v1731_v0 }
  0x5d   :  { %2487 = vst [vmem:[#allocation46_spill] sm:$0xff] %v2016_v61  ;;  %v2037_v61 = vrot.slane %v33_v47, %v1755_v8 }
  0x5e   :  { %1097 = vperm.xlu1 %1489, %v1478_v48   ;;  %1092 = vperm.xlu0 %1488, %v1477_v49   ;;  %v1872_v48 = vrot.slane %v23_v28, %v1698_v53  ;;  %v1875_v49 = vrot.slane %v24_v33, %v1698_v53 }
  0x5f   :  { %2493 = vst [vmem:[#allocation52_spill] sm:$0xff] %v2037_v61  ;;  %v2055_v61 = vrot.slane %v26_v50, %v1773_v14 }
  0x61   :  { %2496 = vst [vmem:[#allocation55_spill] sm:$0xff] %v2055_v61 }
  0x62   :  { %1142 = vperm.xlu1 %1489, %v1480_v51   ;;  %1137 = vperm.xlu0 %1488, %v1479_v52   ;;  %v1878_v51 = vrot.slane %v31_v34, %v1698_v53  ;;  %v1881_v52 = vrot.slane %v32_v35, %v1698_v53 }
  0x66   :  { %1187 = vperm.xlu1 %1489, %v1482_v58   ;;  %1182 = vperm.xlu0 %1488, %v1481_v60   ;;  %v1887_v58 = vrot.slane %v24_v33, %v1707_v56  ;;  %v1893_v60 = vrot.slane %v32_v35, %v1707_v56 }
  0x68   :  { %2448 = vst [vmem:[#allocation7_spill] sm:$0xff] %v1887_v58  ;;  %2450 = vst [vmem:[#allocation9_spill] sm:$0xff] %v1893_v60  ;;  %v1956_v60 = vrot.slane %v23_v28, %v1785_v18  ;;  %v1962_v58 = vrot.slane %v31_v34, %v1785_v18 }
  0x6a   :  { %1232 = vperm.xlu1 %1489, %v1484_v9   ;;  %1227 = vperm.xlu0 %1488, %v1483_v10   ;;  %v1902_v9 = vrot.slane %v31_v34, %v1710_v57  ;;  %v1905_v10 = vrot.slane %v32_v35, %v1710_v57  ;;  %2467 = vst [vmem:[#allocation26_spill] sm:$0xff] %v1956_v60  ;;  %2469 = vst [vmem:[#allocation28_spill] sm:$0xff] %v1962_v58 }
  0x6b   :  { %v2067_v58 = vrot.slane %v26_v50, %v1785_v18 }
  0x6c   :  { %2453 = vst [vmem:[#allocation12_spill] sm:$0xff] %v1902_v9  ;;  %2454 = vst [vmem:[#allocation13_spill] sm:$0xff] %v1905_v10  ;;  %v1923_v9 = vrot.slane %v23_v28, %v1755_v8  ;;  %v1926_v10 = vrot.slane %v24_v33, %v1755_v8 }
  0x6d   :  { %2500 = vst [vmem:[#allocation59_spill] sm:$0xff] %v2067_v58 }
  0x6e   :  { %1260 = vperm.xlu1 %1489, %v1252_v23   ;;  %1255 = vperm.xlu0 %1488, %v1251_v24   ;;  %v1908_v23 = vrot.slane %v23_v28, %v1731_v0  ;;  %v1911_v24 = vrot.slane %v24_v33, %v1731_v0  ;;  %2459 = vst [vmem:[#allocation18_spill] sm:$0xff] %v1923_v9  ;;  %2460 = vst [vmem:[#allocation19_spill] sm:$0xff] %v1926_v10  ;;  %v34_v9 = vld [vmem:[%s2369_s0 + $0x68] sm:$0xff] }
  0x6f   :  { %v1944_v10 = vrot.slane %v23_v28, %v1773_v14  ;;  %v1977_v28 = vrot.slane %v34_v9, %v1704_v55 }
  0x70   :  { %2455 = vst [vmem:[#allocation14_spill] sm:$0xff] %v1908_v23  ;;  %2456 = vst [vmem:[#allocation15_spill] sm:$0xff] %v1911_v24  ;;  %v1929_v23 = vrot.slane %v31_v34, %v1755_v8  ;;  %v1932_v24 = vrot.slane %v32_v35, %v1755_v8 }
  0x71   :  { %2463 = vst [vmem:[#allocation22_spill] sm:$0xff] %v1944_v10  ;;  %v1965_v10 = vrot.slane %v32_v35, %v1785_v18  ;;  %2474 = vst [vmem:[#allocation33_spill] sm:$0xff] %v1977_v28  ;;  %v1986_v35 = vrot.slane %v33_v47, %v1698_v53  ;;  %v1998_v28 = vrot.slane %v33_v47, %v1707_v56 }
  0x72   :  { %2461 = vst [vmem:[#allocation20_spill] sm:$0xff] %v1929_v23  ;;  %2462 = vst [vmem:[#allocation21_spill] sm:$0xff] %v1932_v24  ;;  %v1947_v23 = vrot.slane %v24_v33, %v1773_v14  ;;  %v1950_v24 = vrot.slane %v31_v34, %v1773_v14  ;;  %v1980_v33 = vrot.slane %v25_v62, %v1698_v53 }
  0x73   :  { %2470 = vst [vmem:[#allocation29_spill] sm:$0xff] %v1965_v10  ;;  %v1983_v34 = vrot.slane %v26_v50, %v1698_v53  ;;  %2477 = vst [vmem:[#allocation36_spill] sm:$0xff] %v1986_v35  ;;  %v2007_v35 = vrot.slane %v26_v50, %v1710_v57  ;;  %v2064_v10 = vrot.slane %v25_v62, %v1785_v18 }
  0x74   :  { %2464 = vst [vmem:[#allocation23_spill] sm:$0xff] %v1947_v23  ;;  %2465 = vst [vmem:[#allocation24_spill] sm:$0xff] %v1950_v24  ;;  %v1968_v23 = vrot.slane %v25_v62, %v1704_v55  ;;  %v1971_v24 = vrot.slane %v26_v50, %v1704_v55 }
  0x75   :  { %2475 = vst [vmem:[#allocation34_spill] sm:$0xff] %v1980_v33  ;;  %2476 = vst [vmem:[#allocation35_spill] sm:$0xff] %v1983_v34  ;;  %v2001_v33 = vrot.slane %v34_v9, %v1707_v56  ;;  %v2004_v34 = vrot.slane %v25_v62, %v1710_v57 }
  0x76   :  { %2471 = vst [vmem:[#allocation30_spill] sm:$0xff] %v1968_v23  ;;  %2472 = vst [vmem:[#allocation31_spill] sm:$0xff] %v1971_v24  ;;  %v1989_v23 = vrot.slane %v34_v9, %v1698_v53  ;;  %v1992_v24 = vrot.slane %v25_v62, %v1707_v56 }
  0x77   :  { %2481 = vst [vmem:[#allocation40_spill] sm:$0xff] %v1998_v28  ;;  %2482 = vst [vmem:[#allocation41_spill] sm:$0xff] %v2001_v33  ;;  %v2019_v28 = vrot.slane %v26_v50, %v1731_v0  ;;  %v2022_v33 = vrot.slane %v33_v47, %v1731_v0 }
  0x78   :  { %2478 = vst [vmem:[#allocation37_spill] sm:$0xff] %v1989_v23  ;;  %2479 = vst [vmem:[#allocation38_spill] sm:$0xff] %v1992_v24  ;;  %v2010_v23 = vrot.slane %v33_v47, %v1710_v57  ;;  %v2013_v24 = vrot.slane %v34_v9, %v1710_v57  ;;  %v2034_v57 = vrot.slane %v26_v50, %v1755_v8 }
  0x79   :  { %2483 = vst [vmem:[#allocation42_spill] sm:$0xff] %v2004_v34  ;;  %2484 = vst [vmem:[#allocation43_spill] sm:$0xff] %v2007_v35  ;;  %v2025_v34 = vrot.slane %v34_v9, %v1731_v0  ;;  %v27_v35 = vld [vmem:[%s2369_s0 + $0x30] sm:$0x7]  ;;  %v28_v0 = vld [vmem:[%s2369_s0 + $0x38] sm:$0x7] }
  0x7a   :  { %2485 = vst [vmem:[#allocation44_spill] sm:$0xff] %v2010_v23  ;;  %2486 = vst [vmem:[#allocation45_spill] sm:$0xff] %v2013_v24  ;;  %v2031_v23 = vrot.slane %v25_v62, %v1755_v8  ;;  %v2076_v61 = vrot.slane %v27_v35, %v1704_v55  ;;  %v2088_v50 = vrot.slane %v27_v35, %v1698_v53 }
  0x7b   :  { %2488 = vst [vmem:[#allocation47_spill] sm:$0xff] %v2019_v28  ;;  %2489 = vst [vmem:[#allocation48_spill] sm:$0xff] %v2022_v33  ;;  %v2040_v28 = vrot.slane %v34_v9, %v1755_v8  ;;  %v2058_v8 = vrot.slane %v33_v47, %v1773_v14  ;;  %v2091_v47 = vrot.slane %v28_v0, %v1698_v53 }
  0x7c   :  { %2490 = vst [vmem:[#allocation49_spill] sm:$0xff] %v2025_v34  ;;  %2491 = vst [vmem:[#allocation50_spill] sm:$0xff] %v2031_v23  ;;  %v35_v34 = vld [vmem:[%s2369_s0 + $0x70] sm:$0x7]  ;;  %v36_v23 = vld [vmem:[%s2369_s0 + $0x78] sm:$0x7] }
  0x7d   :  { %2492 = vst [vmem:[#allocation51_spill] sm:$0xff] %v2034_v57  ;;  %2494 = vst [vmem:[#allocation53_spill] sm:$0xff] %v2040_v28  ;;  %v2052_v57 = vrot.slane %v25_v62, %v1773_v14  ;;  %v2061_v28 = vrot.slane %v34_v9, %v1773_v14  ;;  %v103_v33 = vpop.permute.xlu1 %102  ;;  %v58_v24 = vpop.permute.xlu0 %57  ;;  %v2079_v14 = vrot.slane %v28_v0, %v1704_v55 }
  0x7e   :  { %2497 = vst [vmem:[#allocation56_spill] sm:$0xff] %v2058_v8  ;;  %2499 = vst [vmem:[#allocation58_spill] sm:$0xff] %v2064_v10  ;;  %v2085_v62 = vrot.slane %v36_v23, %v1704_v55 }
  0x7f   :  { %2495 = vst [vmem:[#allocation54_spill] sm:$0xff] %v2052_v57  ;;  %2498 = vst [vmem:[#allocation57_spill] sm:$0xff] %v2061_v28  ;;  %v2073_v57 = vrot.slane %v34_v9, %v1785_v18  ;;  %v2082_v28 = vrot.slane %v35_v34, %v1704_v55  ;;  %v2094_v18 = vrot.slane %v35_v34, %v1698_v53 }
  0x80   :  { %2503 = vst [vmem:[#allocation62_spill] sm:$0xff] %v2076_v61  ;;  %2504 = vst [vmem:[#allocation63_spill] sm:$0xff] %v2079_v14  ;;  %v2097_v9 = vrot.slane %v36_v23, %v1698_v53  ;;  %v2100_v14 = vrot.slane %v27_v35, %v1707_v56  ;;  %v2106_v55 = vrot.slane %v35_v34, %v1707_v56 }
  0x81   :  { %2502 = vst [vmem:[#allocation61_spill] sm:$0xff] %v2073_v57  ;;  %2505 = vst [vmem:[#allocation64_spill] sm:$0xff] %v2082_v28  ;;  %v2103_v28 = vrot.slane %v28_v0, %v1707_v56  ;;  %v66_v53 = vmul.f32 %v58_v24, %v1752_v7  ;;  %v63_v35 = vpop.permute.xlu0 %62  ;;  %v114_v61 = vmul.f32 %v103_v33, %v1746_v5 }
  0x82   :  { %2506 = vst [vmem:[#allocation65_spill] sm:$0xff] %v2085_v62  ;;  %2507 = vst [vmem:[#allocation66_spill] sm:$0xff] %v2088_v50  ;;  %v2109_v50 = vrot.slane %v36_v23, %v1707_v56  ;;  %v111_v62 = vmul.f32 %v103_v33, %v1734_v1  ;;  %v67_v56 = vmul.f32 %v63_v35, %v1737_v2 }
  0x83   :  { %2508 = vst [vmem:[#allocation67_spill] sm:$0xff] %v2091_v47  ;;  %2509 = vst [vmem:[#allocation68_spill] sm:$0xff] %v2094_v18  ;;  %v110_v47 = vmul.f32 %v103_v33, %v1728_v63  ;;  %v65_v18 = vmul.f32 %v58_v24, %v1737_v2  ;;  %v68_v23 = vmul.f32 %v63_v35, %v1752_v7 }
  0x84   :  { %2510 = vst [vmem:[#allocation69_spill] sm:$0xff] %v2097_v9  ;;  %2511 = vst [vmem:[#allocation70_spill] sm:$0xff] %v2100_v14  ;;  %v108_v9 = vpop.permute.xlu1 %107  ;;  %v115_v57 = vmul.f32 %v103_v33, %v1749_v6  ;;  %v119_v58 = vadd.f32 %v111_v62, %v66_v53 }
  0x85   :  { %2512 = vst [vmem:[#allocation71_spill] sm:$0xff] %v2103_v28  ;;  %2513 = vst [vmem:[#allocation72_spill] sm:$0xff] %v2106_v55  ;;  %v112_v14 = vmul.f32 %v108_v9, %v1728_v63  ;;  %v113_v0 = vmul.f32 %v108_v9, %v1734_v1  ;;  %v116_v34 = vmul.f32 %v108_v9, %v1746_v5  ;;  %v148_v2 = vpop.permute.xlu0 %147 }
  0x86   :  { %2514 = vst [vmem:[#allocation73_spill] sm:$0xff] %v2109_v50  ;;  %v117_v55 = vmul.f32 %v108_v9, %v1749_v6  ;;  %v71_v50 = vmul.f32 %v63_v35, %v1764_v11  ;;  %v72_v28 = vmul.f32 %v63_v35, %v1767_v12  ;;  %v69_v63 = vmul.f32 %v58_v24, %v1764_v11 }
  0x87   :  { %v70_v1 = vmul.f32 %v58_v24, %v1767_v12  ;;  %v118_v59 = vadd.f32 %v110_v47, %v65_v18  ;;  %v120_v10 = vadd.f32 %v112_v14, %v67_v56  ;;  %v121_v9 = vadd.f32 %v113_v0, %v68_v23 }
  0x88   :  { %v153_v8 = vpop.permute.xlu1 %152  ;;  %v124_v54 = vadd.f32 %v116_v34, %v71_v50  ;;  %v125_v6 = vadd.f32 %v117_v55, %v72_v28  ;;  %v155_v11 = vmul.f32 %v148_v2, %v1740_v3  ;;  %v156_v12 = vmul.f32 %v148_v2, %v1770_v13 }
  0x89   :  { %v157_v7 = vmul.f32 %v153_v8, %v1740_v3  ;;  %v158_v60 = vmul.f32 %v153_v8, %v1770_v13  ;;  %v161_v35 = vmul.f32 %v153_v8, %v1776_v15  ;;  %v162_v5 = vmul.f32 %v153_v8, %v1779_v16  ;;  %v193_v23 = vpop.permute.xlu0 %192 }
  0x8a   :  { %v122_v24 = vadd.f32 %v114_v61, %v69_v63  ;;  %v123_v33 = vadd.f32 %v115_v57, %v70_v1  ;;  %v159_v14 = vmul.f32 %v148_v2, %v1776_v15  ;;  %v160_v62 = vmul.f32 %v148_v2, %v1779_v16 }
  0x8b   :  { %v165_v47 = vadd.f32 %v157_v7, %v120_v10  ;;  %v166_v18 = vadd.f32 %v158_v60, %v121_v9  ;;  %v169_v53 = vadd.f32 %v161_v35, %v124_v54  ;;  %v170_v0 = vadd.f32 %v162_v5, %v125_v6 }
  0x8c   :  { %v198_v56 = vpop.permute.xlu1 %197  ;;  %v163_v61 = vadd.f32 %v155_v11, %v118_v59  ;;  %v164_v57 = vadd.f32 %v156_v12, %v119_v58  ;;  %v200_v15 = vmul.f32 %v193_v23, %v1743_v4  ;;  %v201_v16 = vmul.f32 %v193_v23, %v1782_v17 }
  0x8d   :  { %v202_v8 = vmul.f32 %v198_v56, %v1743_v4  ;;  %v203_v28 = vmul.f32 %v198_v56, %v1782_v17  ;;  %v206_v3 = vmul.f32 %v198_v56, %v1788_v19  ;;  %v207_v13 = vmul.f32 %v198_v56, %v1791_v20  ;;  %v238_v2 = vpop.permute.xlu0 %237 }
  0x8e   :  { %v167_v10 = vadd.f32 %v159_v14, %v122_v24  ;;  %v168_v60 = vadd.f32 %v160_v62, %v123_v33  ;;  %v204_v54 = vmul.f32 %v193_v23, %v1788_v19  ;;  %v205_v50 = vmul.f32 %v193_v23, %v1791_v20 }
  0x8f   :  { %v210_v55 = vadd.f32 %v202_v8, %v165_v47  ;;  %v211_v34 = vadd.f32 %v203_v28, %v166_v18  ;;  %v214_v63 = vadd.f32 %v206_v3, %v169_v53  ;;  %v215_v1 = vadd.f32 %v207_v13, %v170_v0 }
  0x90   :  { %v243_v9 = vpop.permute.xlu1 %242  ;;  %v208_v59 = vadd.f32 %v200_v15, %v163_v61  ;;  %v209_v35 = vadd.f32 %v201_v16, %v164_v57  ;;  %v245_v19 = vmul.f32 %v238_v2, %v1794_v21  ;;  %v246_v20 = vmul.f32 %v238_v2, %v1797_v22 }
  0x91   :  { %v247_v7 = vmul.f32 %v243_v9, %v1794_v21  ;;  %v248_v58 = vmul.f32 %v243_v9, %v1797_v22  ;;  %v251_v4 = vmul.f32 %v243_v9, %v1806_v25  ;;  %v252_v17 = vmul.f32 %v243_v9, %v1809_v26  ;;  %v283_v18 = vpop.permute.xlu0 %282 }
  0x92   :  { %v212_v5 = vadd.f32 %v204_v54, %v167_v10  ;;  %v213_v6 = vadd.f32 %v205_v50, %v168_v60  ;;  %v249_v11 = vmul.f32 %v238_v2, %v1806_v25  ;;  %v250_v12 = vmul.f32 %v238_v2, %v1809_v26 }
  0x93   :  { %v255_v24 = vadd.f32 %v247_v7, %v210_v55  ;;  %v256_v33 = vadd.f32 %v248_v58, %v211_v34  ;;  %v259_v14 = vadd.f32 %v251_v4, %v214_v63  ;;  %v260_v62 = vadd.f32 %v252_v17, %v215_v1 }
  0x94   :  { %v288_v47 = vpop.permute.xlu1 %287  ;;  %v253_v56 = vadd.f32 %v245_v19, %v208_v59  ;;  %v254_v23 = vadd.f32 %v246_v20, %v209_v35  ;;  %v290_v25 = vmul.f32 %v283_v18, %v1812_v27  ;;  %v291_v26 = vmul.f32 %v283_v18, %v1818_v29 }
  0x95   :  { %v292_v53 = vmul.f32 %v288_v47, %v1812_v27  ;;  %v293_v0 = vmul.f32 %v288_v47, %v1818_v29  ;;  %v296_v21 = vmul.f32 %v288_v47, %v1821_v30  ;;  %v297_v22 = vmul.f32 %v288_v47, %v1824_v31  ;;  %v328_v60 = vpop.permute.xlu0 %327 }
  0x96   :  { %v257_v8 = vadd.f32 %v249_v11, %v212_v5  ;;  %v258_v28 = vadd.f32 %v250_v12, %v213_v6  ;;  %v294_v3 = vmul.f32 %v283_v18, %v1821_v30  ;;  %v295_v13 = vmul.f32 %v283_v18, %v1824_v31 }
  0x97   :  { %v300_v61 = vadd.f32 %v292_v53, %v255_v24  ;;  %v301_v57 = vadd.f32 %v293_v0, %v256_v33  ;;  %v304_v15 = vadd.f32 %v296_v21, %v259_v14  ;;  %v305_v16 = vadd.f32 %v297_v22, %v260_v62 }
  0x98   :  { %v333_v10 = vpop.permute.xlu1 %332  ;;  %v298_v55 = vadd.f32 %v290_v25, %v253_v56  ;;  %v299_v34 = vadd.f32 %v291_v26, %v254_v23  ;;  %v335_v30 = vmul.f32 %v328_v60, %v1827_v32  ;;  %v336_v31 = vmul.f32 %v328_v60, %v1839_v36 }
  0x99   :  { %v337_v54 = vmul.f32 %v333_v10, %v1827_v32  ;;  %v338_v50 = vmul.f32 %v333_v10, %v1839_v36  ;;  %v341_v27 = vmul.f32 %v333_v10, %v1842_v37  ;;  %v342_v29 = vmul.f32 %v333_v10, %v1845_v38  ;;  %v373_v35 = vpop.permute.xlu0 %372 }
  0x9a   :  { %v302_v63 = vadd.f32 %v294_v3, %v257_v8  ;;  %v303_v1 = vadd.f32 %v295_v13, %v258_v28  ;;  %v339_v9 = vmul.f32 %v328_v60, %v1842_v37  ;;  %v340_v2 = vmul.f32 %v328_v60, %v1845_v38 }
  0x9b   :  { %v345_v7 = vadd.f32 %v337_v54, %v300_v61  ;;  %v346_v58 = vadd.f32 %v338_v50, %v301_v57  ;;  %v349_v4 = vadd.f32 %v341_v27, %v304_v15  ;;  %v350_v17 = vadd.f32 %v342_v29, %v305_v16 }
  0x9c   :  { %v378_v59 = vpop.permute.xlu1 %377  ;;  %v343_v5 = vadd.f32 %v335_v30, %v298_v55  ;;  %v344_v6 = vadd.f32 %v336_v31, %v299_v34  ;;  %v380_v37 = vmul.f32 %v373_v35, %v1848_v39  ;;  %v381_v38 = vmul.f32 %v373_v35, %v1851_v40 }
  0x9d   :  { %v382_v19 = vmul.f32 %v378_v59, %v1848_v39  ;;  %v383_v20 = vmul.f32 %v378_v59, %v1851_v40  ;;  %v386_v32 = vmul.f32 %v378_v59, %v1854_v41  ;;  %v387_v36 = vmul.f32 %v378_v59, %v1857_v42  ;;  %v418_v0 = vpop.permute.xlu0 %417  ;;  %v2517_v59 = vld [vmem:[#allocation8_spill] sm:$0xff] }
  0x9e   :  { %v347_v11 = vadd.f32 %v339_v9, %v302_v63  ;;  %v348_v12 = vadd.f32 %v340_v2, %v303_v1  ;;  %v384_v24 = vmul.f32 %v373_v35, %v1854_v41  ;;  %v385_v33 = vmul.f32 %v373_v35, %v1857_v42  ;;  %v2518_v35 = vld [vmem:[#allocation9_spill] sm:$0xff] }
  0x9f   :  { %v390_v14 = vadd.f32 %v382_v19, %v345_v7  ;;  %v391_v62 = vadd.f32 %v383_v20, %v346_v58  ;;  %v394_v47 = vadd.f32 %v386_v32, %v349_v4  ;;  %v395_v18 = vadd.f32 %v387_v36, %v350_v17  ;;  %v2515_v7 = vld [vmem:[#allocation6_spill] sm:$0xff]  ;;  %v2516_v4 = vld [vmem:[#allocation7_spill] sm:$0xff] }
  0xa0   :  { %v423_v53 = vpop.permute.xlu1 %422  ;;  %v388_v56 = vadd.f32 %v380_v37, %v343_v5  ;;  %v389_v23 = vadd.f32 %v381_v38, %v344_v6  ;;  %v425_v41 = vmul.f32 %v418_v0, %v1860_v43  ;;  %v426_v42 = vmul.f32 %v418_v0, %v1863_v44 }
  0xa1   :  { %v427_v21 = vmul.f32 %v423_v53, %v1860_v43  ;;  %v428_v22 = vmul.f32 %v423_v53, %v1863_v44  ;;  %v431_v39 = vmul.f32 %v423_v53, %v1866_v45  ;;  %v432_v40 = vmul.f32 %v423_v53, %v1869_v46  ;;  %v463_v16 = vpop.permute.xlu0 %462  ;;  %v2521_v53 = vld [vmem:[#allocation12_spill] sm:$0xff] }
  0xa2   :  { %v392_v25 = vadd.f32 %v384_v24, %v347_v11  ;;  %v393_v26 = vadd.f32 %v385_v33, %v348_v12  ;;  %v429_v8 = vmul.f32 %v418_v0, %v1866_v45  ;;  %v430_v28 = vmul.f32 %v418_v0, %v1869_v46 }
  0xa3   :  { %v435_v3 = vadd.f32 %v427_v21, %v390_v14  ;;  %v436_v13 = vadd.f32 %v428_v22, %v391_v62  ;;  %v439_v61 = vadd.f32 %v431_v39, %v394_v47  ;;  %v440_v57 = vadd.f32 %v432_v40, %v395_v18  ;;  %v2519_v14 = vld [vmem:[#allocation10_spill] sm:$0xff]  ;;  %v2520_v47 = vld [vmem:[#allocation11_spill] sm:$0xff]  ;;  %v2522_v21 = vld [vmem:[#allocation13_spill] sm:$0xff] }
  0xa4   :  { %v468_v15 = vpop.permute.xlu1 %467  ;;  %v433_v54 = vadd.f32 %v425_v41, %v388_v56  ;;  %v434_v50 = vadd.f32 %v426_v42, %v389_v23  ;;  %v470_v45 = vmul.f32 %v463_v16, %v1872_v48  ;;  %v471_v46 = vmul.f32 %v463_v16, %v1875_v49 }
  0xa5   :  { %v472_v10 = vmul.f32 %v468_v15, %v1872_v48  ;;  %v473_v60 = vmul.f32 %v468_v15, %v1875_v49  ;;  %v476_v43 = vmul.f32 %v468_v15, %v1878_v51  ;;  %v477_v44 = vmul.f32 %v468_v15, %v1881_v52  ;;  %v508_v2 = vpop.permute.xlu0 %507  ;;  %v2523_v15 = vld [vmem:[#allocation14_spill] sm:$0xff] }
  0xa6   :  { %v437_v27 = vadd.f32 %v429_v8, %v392_v25  ;;  %v438_v29 = vadd.f32 %v430_v28, %v393_v26  ;;  %v474_v55 = vmul.f32 %v463_v16, %v1878_v51  ;;  %v475_v34 = vmul.f32 %v463_v16, %v1881_v52 }
  0xa7   :  { %v480_v30 = vadd.f32 %v472_v10, %v435_v3  ;;  %v481_v31 = vadd.f32 %v473_v60, %v436_v13  ;;  %v484_v63 = vadd.f32 %v476_v43, %v439_v61  ;;  %v485_v1 = vadd.f32 %v477_v44, %v440_v57  ;;  %v2524_v10 = vld [vmem:[#allocation15_spill] sm:$0xff]  ;;  %v2525_v43 = vld [vmem:[#allocation16_spill] sm:$0xff] }
  0xa8   :  { %v513_v9 = vpop.permute.xlu1 %512  ;;  %v478_v19 = vadd.f32 %v470_v45, %v433_v54  ;;  %v479_v20 = vadd.f32 %v471_v46, %v434_v50  ;;  %v515_v51 = vmul.f32 %v508_v2, %v2515_v7  ;;  %v516_v52 = vmul.f32 %v508_v2, %v2516_v4  ;;  %v2526_v54 = vld [vmem:[#allocation17_spill] sm:$0xff] }
  0xa9   :  { %v517_v58 = vmul.f32 %v513_v9, %v2515_v7  ;;  %v518_v17 = vmul.f32 %v513_v9, %v2516_v4  ;;  %v521_v48 = vmul.f32 %v513_v9, %v2517_v59  ;;  %v522_v49 = vmul.f32 %v513_v9, %v2518_v35  ;;  %v553_v33 = vpop.permute.xlu0 %552  ;;  %v2527_v4 = vld [vmem:[#allocation18_spill] sm:$0xff] }
  0xaa   :  { %v482_v32 = vadd.f32 %v474_v55, %v437_v27  ;;  %v483_v36 = vadd.f32 %v475_v34, %v438_v29  ;;  %v519_v5 = vmul.f32 %v508_v2, %v2517_v59  ;;  %v520_v6 = vmul.f32 %v508_v2, %v2518_v35  ;;  %v2528_v59 = vld [vmem:[#allocation19_spill] sm:$0xff]  ;;  %v2529_v35 = vld [vmem:[#allocation20_spill] sm:$0xff] }
  0xab   :  { %v525_v37 = vadd.f32 %v517_v58, %v480_v30  ;;  %v526_v38 = vadd.f32 %v518_v17, %v481_v31  ;;  %v529_v11 = vadd.f32 %v521_v48, %v484_v63  ;;  %v530_v12 = vadd.f32 %v522_v49, %v485_v1 }
  0xac   :  { %v558_v24 = vpop.permute.xlu1 %557  ;;  %v523_v39 = vadd.f32 %v515_v51, %v478_v19  ;;  %v524_v40 = vadd.f32 %v516_v52, %v479_v20  ;;  %v560_v56 = vmul.f32 %v553_v33, %v2519_v14  ;;  %v561_v23 = vmul.f32 %v553_v33, %v2520_v47  ;;  %v2530_v19 = vld [vmem:[#allocation21_spill] sm:$0xff] }
  0xad   :  { %v562_v62 = vmul.f32 %v558_v24, %v2519_v14  ;;  %v563_v18 = vmul.f32 %v558_v24, %v2520_v47  ;;  %v566_v0 = vmul.f32 %v558_v24, %v2521_v53  ;;  %v567_v22 = vmul.f32 %v558_v24, %v2522_v21  ;;  %v598_v57 = vpop.permute.xlu0 %597  ;;  %v2531_v47 = vld [vmem:[#allocation22_spill] sm:$0xff] }
  0xae   :  { %v527_v41 = vadd.f32 %v519_v5, %v482_v32  ;;  %v528_v42 = vadd.f32 %v520_v6, %v483_v36  ;;  %v564_v25 = vmul.f32 %v553_v33, %v2521_v53  ;;  %v565_v26 = vmul.f32 %v553_v33, %v2522_v21  ;;  %v2532_v53 = vld [vmem:[#allocation23_spill] sm:$0xff]  ;;  %v2533_v21 = vld [vmem:[#allocation24_spill] sm:$0xff] }
  0xaf   :  { %v570_v8 = vadd.f32 %v562_v62, %v525_v37  ;;  %v571_v28 = vadd.f32 %v563_v18, %v526_v38  ;;  %v574_v3 = vadd.f32 %v566_v0, %v529_v11  ;;  %v575_v13 = vadd.f32 %v567_v22, %v530_v12 }
  0xb0   :  { %v603_v61 = vpop.permute.xlu1 %602  ;;  %v568_v45 = vadd.f32 %v560_v56, %v523_v39  ;;  %v569_v46 = vadd.f32 %v561_v23, %v524_v40  ;;  %v605_v27 = vmul.f32 %v598_v57, %v2523_v15  ;;  %v606_v29 = vmul.f32 %v598_v57, %v2524_v10  ;;  %v2534_v39 = vld [vmem:[#allocation25_spill] sm:$0xff] }
  0xb1   :  { %v607_v16 = vmul.f32 %v603_v61, %v2523_v15  ;;  %v608_v60 = vmul.f32 %v603_v61, %v2524_v10  ;;  %v611_v44 = vmul.f32 %v603_v61, %v2525_v43  ;;  %v612_v50 = vmul.f32 %v603_v61, %v2526_v54  ;;  %v643_v58 = vpop.permute.xlu0 %642  ;;  %v2535_v10 = vld [vmem:[#allocation26_spill] sm:$0xff] }
  0xb2   :  { %v572_v55 = vadd.f32 %v564_v25, %v527_v41  ;;  %v573_v34 = vadd.f32 %v565_v26, %v528_v42  ;;  %v609_v30 = vmul.f32 %v598_v57, %v2525_v43  ;;  %v610_v31 = vmul.f32 %v598_v57, %v2526_v54  ;;  %v2536_v43 = vld [vmem:[#allocation27_spill] sm:$0xff]  ;;  %v2537_v54 = vld [vmem:[#allocation28_spill] sm:$0xff] }
  0xb3   :  { %v615_v63 = vadd.f32 %v607_v16, %v570_v8  ;;  %v616_v1 = vadd.f32 %v608_v60, %v571_v28  ;;  %v619_v9 = vadd.f32 %v611_v44, %v574_v3  ;;  %v620_v2 = vadd.f32 %v612_v50, %v575_v13 }
  0xb4   :  { %v648_v7 = vpop.permute.xlu1 %647  ;;  %v613_v51 = vadd.f32 %v605_v27, %v568_v45  ;;  %v614_v52 = vadd.f32 %v606_v29, %v569_v46  ;;  %v650_v32 = vmul.f32 %v643_v58, %v2527_v4  ;;  %v651_v36 = vmul.f32 %v643_v58, %v2528_v59  ;;  %v2538_v45 = vld [vmem:[#allocation29_spill] sm:$0xff] }
  0xb5   :  { %v652_v17 = vmul.f32 %v648_v7, %v2527_v4  ;;  %v653_v48 = vmul.f32 %v648_v7, %v2528_v59  ;;  %v656_v49 = vmul.f32 %v648_v7, %v2529_v35  ;;  %v657_v20 = vmul.f32 %v648_v7, %v2530_v19  ;;  %v688_v62 = vpop.permute.xlu0 %687  ;;  %v2539_v59 = vld [vmem:[#allocation30_spill] sm:$0xff] }
  0xb6   :  { %v617_v5 = vadd.f32 %v609_v30, %v572_v55  ;;  %v618_v6 = vadd.f32 %v610_v31, %v573_v34  ;;  %v654_v37 = vmul.f32 %v643_v58, %v2529_v35  ;;  %v655_v38 = vmul.f32 %v643_v58, %v2530_v19  ;;  %v2540_v35 = vld [vmem:[#allocation31_spill] sm:$0xff]  ;;  %v2541_v19 = vld [vmem:[#allocation32_spill] sm:$0xff] }
  0xb7   :  { %v660_v11 = vadd.f32 %v652_v17, %v615_v63  ;;  %v661_v12 = vadd.f32 %v653_v48, %v616_v1  ;;  %v664_v24 = vadd.f32 %v656_v49, %v619_v9  ;;  %v665_v33 = vadd.f32 %v657_v20, %v620_v2 }
  0xb8   :  { %v693_v14 = vpop.permute.xlu1 %692  ;;  %v658_v56 = vadd.f32 %v650_v32, %v613_v51  ;;  %v659_v23 = vadd.f32 %v651_v36, %v614_v52  ;;  %v695_v41 = vmul.f32 %v688_v62, %v2531_v47  ;;  %v696_v42 = vmul.f32 %v688_v62, %v2532_v53  ;;  %v2542_v51 = vld [vmem:[#allocation33_spill] sm:$0xff] }
  0xb9   :  { %v697_v18 = vmul.f32 %v693_v14, %v2531_v47  ;;  %v698_v0 = vmul.f32 %v693_v14, %v2532_v53  ;;  %v701_v22 = vmul.f32 %v693_v14, %v2533_v21  ;;  %v702_v40 = vmul.f32 %v693_v14, %v2534_v39  ;;  %v733_v16 = vpop.permute.xlu0 %732  ;;  %v2543_v53 = vld [vmem:[#allocation34_spill] sm:$0xff] }
  0xba   :  { %v662_v25 = vadd.f32 %v654_v37, %v617_v5  ;;  %v663_v26 = vadd.f32 %v655_v38, %v618_v6  ;;  %v699_v8 = vmul.f32 %v688_v62, %v2533_v21  ;;  %v700_v28 = vmul.f32 %v688_v62, %v2534_v39  ;;  %v2544_v21 = vld [vmem:[#allocation35_spill] sm:$0xff]  ;;  %v2545_v39 = vld [vmem:[#allocation36_spill] sm:$0xff] }
  0xbb   :  { %v705_v3 = vadd.f32 %v697_v18, %v660_v11  ;;  %v706_v13 = vadd.f32 %v698_v0, %v661_v12  ;;  %v709_v61 = vadd.f32 %v701_v22, %v664_v24  ;;  %v710_v57 = vadd.f32 %v702_v40, %v665_v33 }
  0xbc   :  { %v738_v15 = vpop.permute.xlu1 %737  ;;  %v703_v27 = vadd.f32 %v695_v41, %v658_v56  ;;  %v704_v29 = vadd.f32 %v696_v42, %v659_v23  ;;  %v740_v55 = vmul.f32 %v733_v16, %v2535_v10  ;;  %v741_v34 = vmul.f32 %v733_v16, %v2536_v43  ;;  %v2546_v56 = vld [vmem:[#allocation37_spill] sm:$0xff] }
  0xbd   :  { %v742_v60 = vmul.f32 %v738_v15, %v2535_v10  ;;  %v743_v44 = vmul.f32 %v738_v15, %v2536_v43  ;;  %v746_v50 = vmul.f32 %v738_v15, %v2537_v54  ;;  %v747_v46 = vmul.f32 %v738_v15, %v2538_v45  ;;  %v778_v17 = vpop.permute.xlu0 %777  ;;  %v2547_v43 = vld [vmem:[#allocation38_spill] sm:$0xff] }
  0xbe   :  { %v707_v30 = vadd.f32 %v699_v8, %v662_v25  ;;  %v708_v31 = vadd.f32 %v700_v28, %v663_v26  ;;  %v744_v63 = vmul.f32 %v733_v16, %v2537_v54  ;;  %v745_v1 = vmul.f32 %v733_v16, %v2538_v45  ;;  %v2548_v54 = vld [vmem:[#allocation39_spill] sm:$0xff]  ;;  %v2549_v45 = vld [vmem:[#allocation40_spill] sm:$0xff] }
  0xbf   :  { %v750_v9 = vadd.f32 %v742_v60, %v705_v3  ;;  %v751_v2 = vadd.f32 %v743_v44, %v706_v13  ;;  %v754_v7 = vadd.f32 %v746_v50, %v709_v61  ;;  %v755_v58 = vadd.f32 %v747_v46, %v710_v57 }
  0xc0   :  { %v783_v4 = vpop.permute.xlu1 %782  ;;  %v748_v32 = vadd.f32 %v740_v55, %v703_v27  ;;  %v749_v36 = vadd.f32 %v741_v34, %v704_v29  ;;  %v785_v5 = vmul.f32 %v778_v17, %v2539_v59  ;;  %v786_v6 = vmul.f32 %v778_v17, %v2540_v35  ;;  %v2550_v27 = vld [vmem:[#allocation41_spill] sm:$0xff] }
  0xc1   :  { %v787_v48 = vmul.f32 %v783_v4, %v2539_v59  ;;  %v788_v49 = vmul.f32 %v783_v4, %v2540_v35  ;;  %v791_v20 = vmul.f32 %v783_v4, %v2541_v19  ;;  %v792_v52 = vmul.f32 %v783_v4, %v2542_v51  ;;  %v823_v18 = vpop.permute.xlu0 %822  ;;  %v2551_v35 = vld [vmem:[#allocation42_spill] sm:$0xff] }
  0xc2   :  { %v752_v37 = vadd.f32 %v744_v63, %v707_v30  ;;  %v753_v38 = vadd.f32 %v745_v1, %v708_v31  ;;  %v789_v11 = vmul.f32 %v778_v17, %v2541_v19  ;;  %v790_v12 = vmul.f32 %v778_v17, %v2542_v51  ;;  %v2552_v19 = vld [vmem:[#allocation43_spill] sm:$0xff]  ;;  %v2553_v51 = vld [vmem:[#allocation44_spill] sm:$0xff] }
  0xc3   :  { %v795_v24 = vadd.f32 %v787_v48, %v750_v9  ;;  %v796_v33 = vadd.f32 %v788_v49, %v751_v2  ;;  %v799_v14 = vadd.f32 %v791_v20, %v754_v7  ;;  %v800_v62 = vadd.f32 %v792_v52, %v755_v58 }
  0xc4   :  { %v828_v47 = vpop.permute.xlu1 %827  ;;  %v793_v41 = vadd.f32 %v785_v5, %v748_v32  ;;  %v794_v42 = vadd.f32 %v786_v6, %v749_v36  ;;  %v830_v25 = vmul.f32 %v823_v18, %v2543_v53  ;;  %v831_v26 = vmul.f32 %v823_v18, %v2544_v21  ;;  %v2554_v32 = vld [vmem:[#allocation45_spill] sm:$0xff] }
  0xc5   :  { %v832_v0 = vmul.f32 %v828_v47, %v2543_v53  ;;  %v833_v22 = vmul.f32 %v828_v47, %v2544_v21  ;;  %v836_v40 = vmul.f32 %v828_v47, %v2545_v39  ;;  %v837_v23 = vmul.f32 %v828_v47, %v2546_v56  ;;  %v868_v60 = vpop.permute.xlu0 %867  ;;  %v2555_v21 = vld [vmem:[#allocation46_spill] sm:$0xff] }
  0xc6   :  { %v797_v8 = vadd.f32 %v789_v11, %v752_v37  ;;  %v798_v28 = vadd.f32 %v790_v12, %v753_v38  ;;  %v834_v3 = vmul.f32 %v823_v18, %v2545_v39  ;;  %v835_v13 = vmul.f32 %v823_v18, %v2546_v56  ;;  %v2556_v39 = vld [vmem:[#allocation47_spill] sm:$0xff]  ;;  %v2557_v56 = vld [vmem:[#allocation48_spill] sm:$0xff] }
  0xc7   :  { %v840_v61 = vadd.f32 %v832_v0, %v795_v24  ;;  %v841_v57 = vadd.f32 %v833_v22, %v796_v33  ;;  %v844_v15 = vadd.f32 %v836_v40, %v799_v14  ;;  %v845_v16 = vadd.f32 %v837_v23, %v800_v62 }
  0xc8   :  { %v873_v10 = vpop.permute.xlu1 %872  ;;  %v838_v55 = vadd.f32 %v830_v25, %v793_v41  ;;  %v839_v34 = vadd.f32 %v831_v26, %v794_v42  ;;  %v875_v30 = vmul.f32 %v868_v60, %v2547_v43  ;;  %v876_v31 = vmul.f32 %v868_v60, %v2548_v54  ;;  %v2558_v41 = vld [vmem:[#allocation49_spill] sm:$0xff] }
  0xc9   :  { %v877_v44 = vmul.f32 %v873_v10, %v2547_v43  ;;  %v878_v50 = vmul.f32 %v873_v10, %v2548_v54  ;;  %v881_v46 = vmul.f32 %v873_v10, %v2549_v45  ;;  %v882_v29 = vmul.f32 %v873_v10, %v2550_v27  ;;  %v913_v48 = vpop.permute.xlu0 %912  ;;  %v2559_v54 = vld [vmem:[#allocation50_spill] sm:$0xff] }
  0xca   :  { %v842_v63 = vadd.f32 %v834_v3, %v797_v8  ;;  %v843_v1 = vadd.f32 %v835_v13, %v798_v28  ;;  %v879_v9 = vmul.f32 %v868_v60, %v2549_v45  ;;  %v880_v2 = vmul.f32 %v868_v60, %v2550_v27  ;;  %v2560_v45 = vld [vmem:[#allocation51_spill] sm:$0xff]  ;;  %v2561_v27 = vld [vmem:[#allocation52_spill] sm:$0xff] }
  0xcb   :  { %v885_v7 = vadd.f32 %v877_v44, %v840_v61  ;;  %v886_v58 = vadd.f32 %v878_v50, %v841_v57  ;;  %v889_v4 = vadd.f32 %v881_v46, %v844_v15  ;;  %v890_v17 = vadd.f32 %v882_v29, %v845_v16 }
  0xcc   :  { %v918_v59 = vpop.permute.xlu1 %917  ;;  %v883_v5 = vadd.f32 %v875_v30, %v838_v55  ;;  %v884_v6 = vadd.f32 %v876_v31, %v839_v34  ;;  %v920_v37 = vmul.f32 %v913_v48, %v2551_v35  ;;  %v921_v38 = vmul.f32 %v913_v48, %v2552_v19  ;;  %v2562_v55 = vld [vmem:[#allocation53_spill] sm:$0xff] }
  0xcd   :  { %v922_v49 = vmul.f32 %v918_v59, %v2551_v35  ;;  %v923_v20 = vmul.f32 %v918_v59, %v2552_v19  ;;  %v926_v52 = vmul.f32 %v918_v59, %v2553_v51  ;;  %v927_v36 = vmul.f32 %v918_v59, %v2554_v32  ;;  %v958_v0 = vpop.permute.xlu0 %957  ;;  %v2563_v19 = vld [vmem:[#allocation54_spill] sm:$0xff] }
  0xce   :  { %v887_v11 = vadd.f32 %v879_v9, %v842_v63  ;;  %v888_v12 = vadd.f32 %v880_v2, %v843_v1  ;;  %v924_v24 = vmul.f32 %v913_v48, %v2553_v51  ;;  %v925_v33 = vmul.f32 %v913_v48, %v2554_v32  ;;  %v2564_v51 = vld [vmem:[#allocation55_spill] sm:$0xff]  ;;  %v2565_v32 = vld [vmem:[#allocation56_spill] sm:$0xff] }
  0xcf   :  { %v930_v14 = vadd.f32 %v922_v49, %v885_v7  ;;  %v931_v62 = vadd.f32 %v923_v20, %v886_v58  ;;  %v934_v47 = vadd.f32 %v926_v52, %v889_v4  ;;  %v935_v18 = vadd.f32 %v927_v36, %v890_v17 }
  0xd0   :  { %v963_v53 = vpop.permute.xlu1 %962  ;;  %v928_v25 = vadd.f32 %v920_v37, %v883_v5  ;;  %v929_v26 = vadd.f32 %v921_v38, %v884_v6  ;;  %v965_v8 = vmul.f32 %v958_v0, %v2555_v21  ;;  %v966_v28 = vmul.f32 %v958_v0, %v2556_v39  ;;  %v2566_v5 = vld [vmem:[#allocation57_spill] sm:$0xff] }
  0xd1   :  { %v967_v22 = vmul.f32 %v963_v53, %v2555_v21  ;;  %v968_v40 = vmul.f32 %v963_v53, %v2556_v39  ;;  %v971_v23 = vmul.f32 %v963_v53, %v2557_v56  ;;  %v972_v42 = vmul.f32 %v963_v53, %v2558_v41  ;;  %v1003_v44 = vpop.permute.xlu0 %1002  ;;  %v2567_v39 = vld [vmem:[#allocation58_spill] sm:$0xff] }
  0xd2   :  { %v932_v3 = vadd.f32 %v924_v24, %v887_v11  ;;  %v933_v13 = vadd.f32 %v925_v33, %v888_v12  ;;  %v969_v61 = vmul.f32 %v958_v0, %v2557_v56  ;;  %v970_v57 = vmul.f32 %v958_v0, %v2558_v41  ;;  %v2568_v56 = vld [vmem:[#allocation59_spill] sm:$0xff]  ;;  %v2569_v41 = vld [vmem:[#allocation60_spill] sm:$0xff] }
  0xd3   :  { %v975_v15 = vadd.f32 %v967_v22, %v930_v14  ;;  %v976_v16 = vadd.f32 %v968_v40, %v931_v62  ;;  %v979_v10 = vadd.f32 %v971_v23, %v934_v47  ;;  %v980_v60 = vadd.f32 %v972_v42, %v935_v18 }
  0xd4   :  { %v1008_v43 = vpop.permute.xlu1 %1007  ;;  %v973_v30 = vadd.f32 %v965_v8, %v928_v25  ;;  %v974_v31 = vadd.f32 %v966_v28, %v929_v26  ;;  %v1010_v63 = vmul.f32 %v1003_v44, %v2559_v54  ;;  %v1011_v1 = vmul.f32 %v1003_v44, %v2560_v45  ;;  %v2570_v25 = vld [vmem:[#allocation61_spill] sm:$0xff] }
  0xd5   :  { %v1012_v50 = vmul.f32 %v1008_v43, %v2559_v54  ;;  %v1013_v46 = vmul.f32 %v1008_v43, %v2560_v45  ;;  %v1016_v29 = vmul.f32 %v1008_v43, %v2561_v27  ;;  %v1017_v34 = vmul.f32 %v1008_v43, %v2562_v55  ;;  %v1048_v49 = vpop.permute.xlu0 %1047  ;;  %v2571_v45 = vld [vmem:[#allocation62_spill] sm:$0xff] }
  0xd6   :  { %v977_v9 = vadd.f32 %v969_v61, %v932_v3  ;;  %v978_v2 = vadd.f32 %v970_v57, %v933_v13  ;;  %v1014_v7 = vmul.f32 %v1003_v44, %v2561_v27  ;;  %v1015_v58 = vmul.f32 %v1003_v44, %v2562_v55  ;;  %v2572_v27 = vld [vmem:[#allocation63_spill] sm:$0xff]  ;;  %v2573_v55 = vld [vmem:[#allocation64_spill] sm:$0xff] }
  0xd7   :  { %v1020_v4 = vadd.f32 %v1012_v50, %v975_v15  ;;  %v1021_v17 = vadd.f32 %v1013_v46, %v976_v16  ;;  %v1024_v59 = vadd.f32 %v1016_v29, %v979_v10  ;;  %v1025_v48 = vadd.f32 %v1017_v34, %v980_v60 }
  0xd8   :  { %v1053_v35 = vpop.permute.xlu1 %1052  ;;  %v1018_v37 = vadd.f32 %v1010_v63, %v973_v30  ;;  %v1019_v38 = vadd.f32 %v1011_v1, %v974_v31  ;;  %v1055_v11 = vmul.f32 %v1048_v49, %v2563_v19  ;;  %v1056_v12 = vmul.f32 %v1048_v49, %v2564_v51  ;;  %v2574_v30 = vld [vmem:[#allocation65_spill] sm:$0xff] }
  0xd9   :  { %v1057_v20 = vmul.f32 %v1053_v35, %v2563_v19  ;;  %v1058_v52 = vmul.f32 %v1053_v35, %v2564_v51  ;;  %v1061_v36 = vmul.f32 %v1053_v35, %v2565_v32  ;;  %v1062_v6 = vmul.f32 %v1053_v35, %v2566_v5  ;;  %v1093_v22 = vpop.permute.xlu0 %1092 }
  0xda   :  { %v1022_v24 = vadd.f32 %v1014_v7, %v977_v9  ;;  %v1023_v33 = vadd.f32 %v1015_v58, %v978_v2  ;;  %v1059_v14 = vmul.f32 %v1048_v49, %v2565_v32  ;;  %v1060_v62 = vmul.f32 %v1048_v49, %v2566_v5  ;;  %v2575_v32 = vld [vmem:[#allocation66_spill] sm:$0xff]  ;;  %v2576_v5 = vld [vmem:[#allocation67_spill] sm:$0xff] }
  0xdb   :  { %v1065_v47 = vadd.f32 %v1057_v20, %v1020_v4  ;;  %v1066_v18 = vadd.f32 %v1058_v52, %v1021_v17  ;;  %v1069_v53 = vadd.f32 %v1061_v36, %v1024_v59  ;;  %v1070_v0 = vadd.f32 %v1062_v6, %v1025_v48 }
  0xdc   :  { %v1098_v21 = vpop.permute.xlu1 %1097  ;;  %v1063_v8 = vadd.f32 %v1055_v11, %v1018_v37  ;;  %v1064_v28 = vadd.f32 %v1056_v12, %v1019_v38  ;;  %v1100_v3 = vmul.f32 %v1093_v22, %v2567_v39  ;;  %v1101_v13 = vmul.f32 %v1093_v22, %v2568_v56  ;;  %v2577_v11 = vld [vmem:[#allocation68_spill] sm:$0xff] }
  0xdd   :  { %v1102_v40 = vmul.f32 %v1098_v21, %v2567_v39  ;;  %v1103_v23 = vmul.f32 %v1098_v21, %v2568_v56  ;;  %v1106_v42 = vmul.f32 %v1098_v21, %v2569_v41  ;;  %v1107_v26 = vmul.f32 %v1098_v21, %v2570_v25  ;;  %v1138_v50 = vpop.permute.xlu0 %1137 }
  0xde   :  { %v1067_v61 = vadd.f32 %v1059_v14, %v1022_v24  ;;  %v1068_v57 = vadd.f32 %v1060_v62, %v1023_v33  ;;  %v1104_v15 = vmul.f32 %v1093_v22, %v2569_v41  ;;  %v1105_v16 = vmul.f32 %v1093_v22, %v2570_v25  ;;  %v2578_v24 = vld [vmem:[#allocation69_spill] sm:$0xff]  ;;  %v2579_v41 = vld [vmem:[#allocation70_spill] sm:$0xff]  ;;  %v2580_v25 = vld [vmem:[#allocation71_spill] sm:$0xff] }
  0xdf   :  { %v1110_v10 = vadd.f32 %v1102_v40, %v1065_v47  ;;  %v1111_v60 = vadd.f32 %v1103_v23, %v1066_v18  ;;  %v1114_v43 = vadd.f32 %v1106_v42, %v1069_v53  ;;  %v1115_v44 = vadd.f32 %v1107_v26, %v1070_v0 }
  0xe0   :  { %v1143_v54 = vpop.permute.xlu1 %1142  ;;  %v1108_v63 = vadd.f32 %v1100_v3, %v1063_v8  ;;  %v1109_v1 = vadd.f32 %v1101_v13, %v1064_v28  ;;  %v1145_v9 = vmul.f32 %v1138_v50, %v2571_v45  ;;  %v1146_v2 = vmul.f32 %v1138_v50, %v2572_v27  ;;  %v2581_v3 = vld [vmem:[#allocation72_spill] sm:$0xff] }
  0xe1   :  { %v1147_v46 = vmul.f32 %v1143_v54, %v2571_v45  ;;  %v1148_v29 = vmul.f32 %v1143_v54, %v2572_v27  ;;  %v1151_v34 = vmul.f32 %v1143_v54, %v2573_v55  ;;  %v1152_v31 = vmul.f32 %v1143_v54, %v2574_v30  ;;  %v1183_v20 = vpop.permute.xlu0 %1182 }
  0xe2   :  { %v1112_v7 = vadd.f32 %v1104_v15, %v1067_v61  ;;  %v1113_v58 = vadd.f32 %v1105_v16, %v1068_v57  ;;  %v1149_v4 = vmul.f32 %v1138_v50, %v2573_v55  ;;  %v1150_v17 = vmul.f32 %v1138_v50, %v2574_v30  ;;  %v2582_v61 = vld [vmem:[#allocation73_spill] sm:$0xff] }
  0xe3   :  { %v1155_v59 = vadd.f32 %v1147_v46, %v1110_v10  ;;  %v1156_v48 = vadd.f32 %v1148_v29, %v1111_v60  ;;  %v1159_v35 = vadd.f32 %v1151_v34, %v1114_v43  ;;  %v1160_v49 = vadd.f32 %v1152_v31, %v1115_v44 }
  0xe4   :  { %v1188_v19 = vpop.permute.xlu1 %1187  ;;  %v1153_v51 = vadd.f32 %v1145_v9, %v1108_v63  ;;  %v1154_v52 = vadd.f32 %v1146_v2, %v1109_v1  ;;  %v1190_v37 = vmul.f32 %v1183_v20, %v2575_v32  ;;  %v1191_v38 = vmul.f32 %v1183_v20, %v2576_v5  ;;  %v1281_v9 = vld [vmem:[%s2372_s3 + $0x10] sm:$0xff]  ;;  %v1282_v2 = vld [vmem:[%s2372_s3 + $0x18] sm:$0xff] }
  0xe5   :  { %v1192_v36 = vmul.f32 %v1188_v19, %v2575_v32  ;;  %v1193_v6 = vmul.f32 %v1188_v19, %v2576_v5  ;;  %v1194_v12 = vmul.f32 %v1183_v20, %v2577_v11  ;;  %v1195_v33 = vmul.f32 %v1183_v20, %v2578_v24  ;;  %v1228_v40 = vpop.permute.xlu0 %1227  ;;  %v1283_v32 = vld [vmem:[%s2372_s3 + $0x20] sm:$0xff] }
  0xe6   :  { %v1157_v14 = vadd.f32 %v1149_v4, %v1112_v7  ;;  %v1158_v62 = vadd.f32 %v1150_v17, %v1113_v58  ;;  %v1196_v47 = vmul.f32 %v1188_v19, %v2577_v11  ;;  %v1197_v18 = vmul.f32 %v1188_v19, %v2578_v24 }
  0xe7   :  { %v1200_v53 = vadd.f32 %v1192_v36, %v1155_v59  ;;  %v1201_v0 = vadd.f32 %v1193_v6, %v1156_v48  ;;  %v1198_v21 = vadd.f32 %v1190_v37, %v1153_v51  ;;  %v1199_v22 = vadd.f32 %v1191_v38, %v1154_v52  ;;  %v1279_v59 = vld [vmem:[%s2372_s3] sm:$0xff]  ;;  %v1280_v48 = vld [vmem:[%s2372_s3 + $0x8] sm:$0xff] }
  0xe8   :  { %v1233_v39 = vpop.permute.xlu1 %1232  ;;  %v1202_v56 = vadd.f32 %v1194_v12, %v1157_v14  ;;  %v1203_v23 = vadd.f32 %v1195_v33, %v1158_v62  ;;  %v1235_v8 = vmul.f32 %v1228_v40, %v2579_v41  ;;  %v1236_v28 = vmul.f32 %v1228_v40, %v2580_v25  ;;  %v1284_v36 = vld [vmem:[%s2372_s3 + $0x28] sm:$0xff] }
  0xe9   :  { %v1237_v42 = vmul.f32 %v1233_v39, %v2579_v41  ;;  %v1238_v26 = vmul.f32 %v1233_v39, %v2580_v25  ;;  %v1239_v13 = vmul.f32 %v1228_v40, %v2581_v3  ;;  %v1240_v57 = vmul.f32 %v1228_v40, %v2582_v61  ;;  %v1256_v44 = vpop.permute.xlu0 %1255 }
  0xea   :  { %v1241_v15 = vmul.f32 %v1233_v39, %v2581_v3  ;;  %v1242_v16 = vmul.f32 %v1233_v39, %v2582_v61  ;;  %v1243_v54 = vadd.f32 %v1235_v8, %v1198_v21  ;;  %v1244_v50 = vadd.f32 %v1236_v28, %v1199_v22 }
  0xeb   :  { %v1245_v10 = vadd.f32 %v1237_v42, %v1200_v53  ;;  %v1246_v60 = vadd.f32 %v1238_v26, %v1201_v0  ;;  %v1247_v45 = vadd.f32 %v1239_v13, %v1202_v56  ;;  %v1248_v46 = vadd.f32 %v1240_v57, %v1203_v23 }
  0xec   :  { %v1261_v43 = vpop.permute.xlu1 %1260  ;;  %v1204_v27 = vadd.f32 %v1196_v47, %v1159_v35  ;;  %v1205_v29 = vadd.f32 %v1197_v18, %v1160_v49  ;;  %v1263_v30 = vadd.f32 %v1256_v44, %v1243_v54  ;;  %v1264_v31 = vadd.f32 %v1256_v44, %v1244_v50  ;;  %v1285_v47 = vld [vmem:[%s2372_s3 + $0x30] sm:$0xff]  ;;  %v1286_v18 = vld [vmem:[%s2372_s3 + $0x38] sm:$0xff] }
  0xed   :  { %v1265_v55 = vadd.f32 %v1261_v43, %v1245_v10  ;;  %v1266_v34 = vadd.f32 %v1261_v43, %v1246_v60  ;;  %v1267_v63 = vadd.f32 %v1256_v44, %v1247_v45  ;;  %v1268_v1 = vadd.f32 %v1256_v44, %v1248_v46  ;;  %v2584_v60 = vld [vmem:[#allocation5_spill] sm:$0xff] }
  0xee   :  { %v1249_v7 = vadd.f32 %v1241_v15, %v1204_v27  ;;  %v1250_v58 = vadd.f32 %v1242_v16, %v1205_v29  ;;  %v1271_v35 = vmax.f32 %v1263_v30, 0.0  ;;  %v1272_v49 = vmax.f32 %v1264_v31, 0.0 }
  0xef   :  { %v1273_v4 = vmax.f32 %v1265_v55, 0.0  ;;  %v1274_v17 = vmax.f32 %v1266_v34, 0.0  ;;  %v1275_v19 = vmax.f32 %v1267_v63, 0.0  ;;  %v1276_v20 = vmax.f32 %v1268_v1, 0.0 }
  0xf0   :  { %v1287_v5 = vmul.f32 %v1279_v59, %v1271_v35  ;;  %v1288_v6 = vmul.f32 %v1280_v48, %v1272_v49  ;;  %v1269_v37 = vadd.f32 %v1261_v43, %v1249_v7  ;;  %v1270_v24 = vadd.f32 %v1261_v43, %v1250_v58 }
  0xf1   :  { %v1289_v51 = vmul.f32 %v1281_v9, %v1273_v4  ;;  %v1290_v52 = vmul.f32 %v1282_v2, %v1274_v17  ;;  %v1295_v11 = vmul.f32 %v1279_v59, %v1275_v19  ;;  %v1296_v12 = vmul.f32 %v1280_v48, %v1276_v20 }
  0xf2   :  { %v1303_v33 = vadd.f32 %v1288_v6, %v1287_v5  ;;  %v1291_v14 = vmul.f32 %v1283_v32, %v1271_v35  ;;  %v1292_v62 = vmul.f32 %v1284_v36, %v1272_v49  ;;  %v1299_v0 = vmul.f32 %v1283_v32, %v1275_v19  ;;  %v1485_v19 = vld [vmem:[%s2373_s4] ss:$0 sm:$0xff]  ;;  %s1490_s4 = scalar_lea.vmem %s1426_s25, 32 }
  0xf3   :  { %v1306_v38 = vadd.f32 %v1290_v52, %v1289_v51  ;;  %v1315_v53 = vadd.f32 %v1296_v12, %v1295_v11  ;;  %v1300_v21 = vmul.f32 %v1284_v36, %v1276_v20  ;;  %v1277_v22 = vmax.f32 %v1269_v37, 0.0  ;;  %p1491_p0 = scmp.ne.s32.totalorder %s1426_s25, %s1490_s4  ;;  %p1496_p2 = scmp.lt.s32.totalorder %s1490_s4, %s1490_s4 }
  0xf4   :  { %1304 = vadd.xlane.f32.xlu0 %v1303_v33  ;;  %v1309_v39 = vadd.f32 %v1292_v62, %v1291_v14  ;;  %v1293_v40 = vmul.f32 %v1285_v47, %v1273_v4  ;;  %v1294_v56 = vmul.f32 %v1286_v18, %v1274_v17  ;;  %v1278_v23 = vmax.f32 %v1270_v24, 0.0 }
  0xf5   :  { %1307 = vadd.xlane.f32.xlu1 %v1306_v38  ;;  %v1321_v41 = vadd.f32 %v1300_v21, %v1299_v0  ;;  %v1297_v25 = vmul.f32 %v1281_v9, %v1277_v22  ;;  %v1301_v28 = vmul.f32 %v1285_v47, %v1277_v22  ;;  %v2583_v61 = vlaneseq  ;;  %p1497_p3 = por %p1496_p2, %p1495_p1 }
  0xf6   :  { %v1312_v42 = vadd.f32 %v1294_v56, %v1293_v40  ;;  %v1298_v26 = vmul.f32 %v1282_v2, %v1278_v23  ;;  %v1302_v3 = vmul.f32 %v1286_v18, %v1278_v23 }
  0xf7   :  { %v1336_v57 = vand.u32 127, %v2583_v61  ;;  %p1498_p4 = pnand %p1497_p3, %p1491_p0 }
  0xf8   :  { %1310 = vadd.xlane.f32.xlu0 %v1309_v39  ;;  %v1318_v8 = vadd.f32 %v1298_v26, %v1297_v25  ;;  %v1324_v13 = vadd.f32 %v1302_v3, %v1301_v28 }
  0xf9   :  { %1316 = vadd.xlane.f32.xlu1 %v1315_v53  ;;  %v1341_v15 = vadd.s32 4294967288, %v1336_v57  ;;  %v1339_v43 = vsub.s32 %v1336_v57, %v2584_v60 }
  0xfb   :  { %v1344_v44 = vsub.s32 %v1341_v15, %v2584_v60 }
  0xfc   :  { %1313 = vadd.xlane.f32.xlu0 %v1312_v42 }
  0xfd   :  { %1322 = vadd.xlane.f32.xlu1 %v1321_v41 }
 0x100   :  { %1319 = vadd.xlane.f32.xlu0 %v1318_v8 }
 0x104   :  { %1325 = vadd.xlane.f32.xlu0 %v1324_v13 }
 0x17d   :  { %v1305_v16 = vpop.xlane.xlu0 %1304 }
 0x17e   :  { %v1308_v10 = vpop.xlane.xlu1 %1307  ;;  %v1340_v45 = vrot.slane %v1305_v16, %v1339_v43 }
 0x17f   :  { %v1345_v50 = vrot.slane %v1308_v10, %v1344_v44 }
 0x181   :  { %v1311_v54 = vpop.xlane.xlu0 %1310  ;;  %v1347_v34 = vsel %vm1346_vm0, %v1345_v50, %v1340_v45 }
 0x182   :  { %v1317_v46 = vpop.xlane.xlu1 %1316  ;;  %v1351_v29 = vrot.slane %v1311_v54, %v1339_v43 }
 0x183   :  { %v1360_v58 = vrot.slane %v1317_v46, %v1339_v43 }
 0x185   :  { %v1314_v27 = vpop.xlane.xlu0 %1313 }
 0x186   :  { %v1355_v55 = vrot.slane %v1314_v27, %v1344_v44  ;;  %v1323_v9 = vpop.xlane.xlu1 %1322 }
 0x187   :  { %v1369_v4 = vrot.slane %v1323_v9, %v1339_v43 }
 0x188   :  { %v1356_v30 = vsel %vm1346_vm0, %v1355_v55, %v1351_v29 }
 0x189   :  { %v1320_v31 = vpop.xlane.xlu0 %1319  ;;  %v1376_v63 = vsel %vm1375_vm1, %v1356_v30, %v1347_v34 }
 0x18a   :  { %v1381_v1 = vsel %vm1380_vm2, %v1376_v63, 0.0  ;;  %v1364_v2 = vrot.slane %v1320_v31, %v1344_v44 }
 0x18b   :  { %1382 = vadd.xlane.f32.xlu1 %v1381_v1 }
 0x18c   :  { %v1365_v59 = vsel %vm1346_vm0, %v1364_v2, %v1360_v58 }
 0x18d   :  { %v1326_v7 = vpop.xlane.xlu0 %1325 }
 0x18e   :  { %v1373_v17 = vrot.slane %v1326_v7, %v1344_v44 }
 0x190   :  { %v1374_v48 = vsel %vm1346_vm0, %v1373_v17, %v1369_v4 }
 0x191   :  { %v1377_v35 = vsel %vm1375_vm1, %v1374_v48, %v1365_v59 }
 0x192   :  { %v1384_v49 = vsel %vm1380_vm2, %v1377_v35, 0.0 }
 0x193   :  { %1385 = vadd.xlane.f32.xlu0 %v1384_v49 }
 0x19c   :  { %1394 = vbcast.lane.b32.xlu1 %v1485_v19, 256 }
 0x214   :  { %v1383_v20 = vpop.xlane.xlu1 %1382 }
 0x218   :  { %v1395_v51 = vpop.permute.xlu1 %1394 }
 0x219   :  { %v1397_v52 = vadd.f32 %v1395_v51, %v1383_v20 }
 0x21b   :  { %1402 = vperm.xlu0 %1488, %v1397_v52  }
 0x21c   :  { %v1386_v32 = vpop.xlane.xlu0 %1385 }
 0x21d   :  { %v1398_v36 = vadd.f32 %v1395_v51, %v1386_v32 }
 0x21f   :  { %1405 = vperm.xlu1 %1489, %v1398_v36  }
 0x296   :  { %v1403_v5 = vpop.permute.xlu0 %1402 }
 0x297   :  { %v1410_v37 = vrot.slane %v1403_v5, %v1339_v43 }
 0x29a   :  { %v1406_v6 = vpop.permute.xlu1 %1405 }
 0x29b   :  { %v1414_v38 = vrot.slane %v1406_v6, %v1339_v43 }
 0x29d   :  { %v1415_v11 = vsel %vm1375_vm1, %v1414_v38, %v1410_v37 }
 0x29e   :  { %1418 = vst.msk [vmem:[#allocation2] sm:$0x3] %vm1417_vm3, %v1415_v11 }
 0x29f   :  { %1501 = shalt.err (!%p1498_p4)
}
 0x2a0   :  { %1428 = dma.vmem_to_hbm [thread:$0]  %s1426_s25, 32, %s2374_s5, [#allocation3]  }
 0x2a1   :  { %1510 = dma.done.wait [#allocation3], 32  }
 0x2a2   :  { %1511 = vsyncadd [#allocation3], 4294967264 }
 0x2a3   :  { %1432 = vsyncpa [#allocation3], 1 }

</bundles_post_ra>
